<compile_context>
chip_gen: v7x
topology: tpu7x:2x2x1
jax: 0.10.0
libtpu: 0.0.40
codegen_flags: <defaults>
</compile_context>

<pallas_src>
import jax
import jax.numpy as jnp
from jax import lax
from jax.experimental import pallas as pl
from jax.experimental.pallas import tpu as pltpu

EPS = 1e-5
LANE = 128
MATMUL_DTYPE = jnp.bfloat16   # MXU operand dtype (accumulation stays f32)
ACT_DTYPE = jnp.bfloat16      # storage dtype for intermediate conv outputs


def _round_up(x, m):
    return (x + m - 1) // m * m


# ---------------------------------------------------------------------------
# Kernel 1: 2x2 max-pool (stride 2) that writes the zero-bordered pooled image
# (N, Ho+2, Wo+2, C) directly (saves the jnp.pad copy before conv1).
# Grid: (N, Ho+2); one padded pooled row per program.
# ---------------------------------------------------------------------------
def _make_pool_kernel(Ho, Wo, C):
    def kernel(x_ref, o_ref):
        r = pl.program_id(1)

        @pl.when((r == 0) | (r == Ho + 1))
        def _():
            o_ref[...] = jnp.zeros(o_ref.shape, o_ref.dtype)

        @pl.when((r > 0) & (r <= Ho))
        def _():
            # x_ref: (1, 2, W, C) = the two raw rows feeding pooled row r-1.
            a = x_ref[:, 0:1, pl.ds(0, Wo, 2), :]   # even cols, raw row 0
            b = x_ref[:, 0:1, pl.ds(1, Wo, 2), :]   # odd  cols, raw row 0
            c = x_ref[:, 1:2, pl.ds(0, Wo, 2), :]   # even cols, raw row 1
            d = x_ref[:, 1:2, pl.ds(1, Wo, 2), :]   # odd  cols, raw row 1
            m = jnp.maximum(jnp.maximum(a, b), jnp.maximum(c, d))  # (1,1,Wo,C)
            z = jnp.zeros((1, 1, 1, C), o_ref.dtype)
            o_ref[:, :, 0:1, :] = z
            o_ref[:, :, Wo + 1:Wo + 2, :] = z
            o_ref[:, :, 1:Wo + 1, :] = m.astype(o_ref.dtype)

    return kernel


def maxpool2x2_pad(x_nhwc):
    N, H, W, C = x_nhwc.shape
    Ho, Wo = H // 2, W // 2
    kernel = _make_pool_kernel(Ho, Wo, C)
    return pl.pallas_call(
        kernel,
        grid=(N, Ho + 2),
        in_specs=[
            pl.BlockSpec((1, 2, W, C),
                         lambda n, r: (n, jnp.clip(r - 1, 0, Ho - 1), 0, 0)),
        ],
        out_specs=pl.BlockSpec((1, 1, Wo + 2, C), lambda n, r: (n, r, 0, 0)),
        out_shape=jax.ShapeDtypeStruct((N, Ho + 2, Wo + 2, C), x_nhwc.dtype),
        compiler_params=pltpu.CompilerParams(
            dimension_semantics=("parallel", "parallel")),
    )(x_nhwc)


# ---------------------------------------------------------------------------
# Kernel 2: one output row of Conv3x3('same') as 9 accumulated MXU matmuls plus
# per-row BatchNorm partial statistics (sum, sum of squares).
#   apply_act : fuse the PREVIOUS layer's folded BN+ReLU (per-channel
#               scale/shift) onto the input rows as they are read, with masks
#               so the spatial zero-padding stays zero after affine+ReLU.
#   pad_output: write the output row into a zero-bordered (Ho+2, Wo+2) layout
#               so the next conv can consume it without a jnp.pad copy.
# Grid: (N, Ho+2) if pad_output else (N, Ho).
# ---------------------------------------------------------------------------
def _make_conv_kernel(Ho, Wo, Cin, Cp, apply_act, pad_output):
    Wp = Wo + 2

    def compute(row_refs, w_ref, scale_ref, shift_ref, y_ref, st_ref):
        r = pl.program_id(1)

        if apply_act:
            scale = scale_ref[...].astype(jnp.float32)   # (1, Cin)
            shift = shift_ref[...].astype(jnp.float32)
            col = lax.broadcasted_iota(jnp.int32, (Wp, 1), 0)
            colmask = ((col > 0) & (col < Wp - 1)).astype(jnp.float32)

        taps = []
        for k in range(3):
            raw = row_refs[k][...].reshape(Wp, Cin)
            if apply_act:
                # padded-row index actually read by this tap
                pr = r + k - (1 if pad_output else 0)
                rowvalid = ((pr >= 1) & (pr <= Ho)).astype(jnp.float32)
                a = jnp.maximum(raw.astype(jnp.float32) * scale + shift, 0.0)
                a = a * colmask * rowvalid          # keep spatial padding at 0
                taps.append(a.astype(MATMUL_DTYPE))
            else:
                taps.append(raw.astype(MATMUL_DTYPE))

        acc = jnp.zeros((Wo, Cp), jnp.float32)
        for dy in range(3):
            for dx in range(3):
                acc = acc + jnp.dot(taps[dy][dx:dx + Wo, :],
                                    w_ref[dy * 3 + dx],
                                    preferred_element_type=jnp.float32)

        # streaming BN partial stats for this row (reduced in the wrapper)
        st_ref[:, :, 0:1, :] = jnp.sum(acc, axis=0, keepdims=True)[None, None]
        st_ref[:, :, 1:2, :] = jnp.sum(acc * acc, axis=0,
                                       keepdims=True)[None, None]

        if pad_output:
            z = jnp.zeros((1, 1, 1, Cp), y_ref.dtype)
            y_ref[:, :, 0:1, :] = z
            y_ref[:, :, Wp - 1:Wp, :] = z
            y_ref[:, :, 1:Wp - 1, :] = acc.astype(y_ref.dtype)[None, None]
        else:
            y_ref[...] = acc.astype(y_ref.dtype)[None, None]

    def dispatch(row_refs, w_ref, scale_ref, shift_ref, y_ref, st_ref):
        if not pad_output:
            compute(row_refs, w_ref, scale_ref, shift_ref, y_ref, st_ref)
            return
        r = pl.program_id(1)
        border = (r == 0) | (r == Ho + 1)

        @pl.when(border)
        def _():
            y_ref[...] = jnp.zeros(y_ref.shape, y_ref.dtype)
            st_ref[...] = jnp.zeros(st_ref.shape, st_ref.dtype)

        @pl.when(jnp.logical_not(border))
        def _():
            compute(row_refs, w_ref, scale_ref, shift_ref, y_ref, st_ref)

    if apply_act:
        def kernel(xm_ref, x0_ref, xp_ref, w_ref, scale_ref, shift_ref,
                   y_ref, st_ref):
            dispatch((xm_ref, x0_ref, xp_ref), w_ref, scale_ref, shift_ref,
                     y_ref, st_ref)
    else:
        def kernel(xm_ref, x0_ref, xp_ref, w_ref, y_ref, st_ref):
            dispatch((xm_ref, x0_ref, xp_ref), w_ref, None, None,
                     y_ref, st_ref)

    return kernel


def conv3x3_row(x_pad, w9, scale, shift, *, apply_act, pad_output, out_dtype):
    """x_pad: (N, Ho+2, Wo+2, Cin) spatially padded activation.
       w9:    (9, Cin, Cp) channel-padded weights (MATMUL_DTYPE).
       scale/shift: (1, Cin) folded BN affine of the input activation, or None.
    Returns (y, stats) with y: (N, Ho+2, Wo+2, Cp) if pad_output else
    (N, Ho, Wo, Cp), and stats: (N, rows, 2, Cp) per-row (sum, sum_sq)."""
    N, Hp2, Wp2, Cin = x_pad.shape
    Ho, Wo = Hp2 - 2, Wp2 - 2
    Cp = w9.shape[-1]
    rows = Ho + 2 if pad_output else Ho
    kernel = _make_conv_kernel(Ho, Wo, Cin, Cp, apply_act, pad_output)

    if pad_output:
        row_maps = [
            lambda n, r: (n, jnp.clip(r - 1, 0, Ho + 1), 0, 0),
            lambda n, r: (n, r, 0, 0),
            lambda n, r: (n, jnp.clip(r + 1, 0, Ho + 1), 0, 0),
        ]
    else:
        row_maps = [
            lambda n, r: (n, r, 0, 0),
            lambda n, r: (n, r + 1, 0, 0),
            lambda n, r: (n, r + 2, 0, 0),
        ]

    in_specs = [pl.BlockSpec((1, 1, Wp2, Cin), m) for m in row_maps]
    in_specs.append(pl.BlockSpec((9, Cin, Cp), lambda n, r: (0, 0, 0)))
    args = [x_pad, x_pad, x_pad, w9]
    if apply_act:
        in_specs.append(pl.BlockSpec((1, Cin), lambda n, r: (0, 0)))
        in_specs.append(pl.BlockSpec((1, Cin), lambda n, r: (0, 0)))
        args += [scale, shift]

    y_cols = Wp2 if pad_output else Wo
    out_shape = (
        jax.ShapeDtypeStruct((N, rows, y_cols, Cp), out_dtype),
        jax.ShapeDtypeStruct((N, rows, 2, Cp), jnp.float32),
    )
    out_specs = (
        pl.BlockSpec((1, 1, y_cols, Cp), lambda n, r: (n, r, 0, 0)),
        pl.BlockSpec((1, 1, 2, Cp), lambda n, r: (n, r, 0, 0)),
    )
    return pl.pallas_call(
        kernel,
        grid=(N, rows),
        in_specs=in_specs,
        out_specs=out_specs,
        out_shape=out_shape,
        compiler_params=pltpu.CompilerParams(
            dimension_semantics=("parallel", "parallel")),
    )(*args)


# ---------------------------------------------------------------------------
# Kernel 3: final BN+ReLU apply (per-channel scale/shift, folded in wrapper).
# ---------------------------------------------------------------------------
def _bn_relu_kernel(y_ref, scale_ref, shift_ref, o_ref):
    y = y_ref[...].astype(jnp.float32)
    o_ref[...] = jnp.maximum(y * scale_ref[...] + shift_ref[...], 0.0
                             ).astype(o_ref.dtype)


def bn_relu_apply(y, scale, shift):
    N, Ho, Wo, Cp = y.shape
    return pl.pallas_call(
        _bn_relu_kernel,
        grid=(N, Ho),
        in_specs=[
            pl.BlockSpec((1, 1, Wo, Cp), lambda n, r: (n, r, 0, 0)),
            pl.BlockSpec((1, Cp), lambda n, r: (0, 0)),
            pl.BlockSpec((1, Cp), lambda n, r: (0, 0)),
        ],
        out_specs=pl.BlockSpec((1, 1, Wo, Cp), lambda n, r: (n, r, 0, 0)),
        out_shape=jax.ShapeDtypeStruct((N, Ho, Wo, Cp), jnp.float32),
        compiler_params=pltpu.CompilerParams(
            dimension_semantics=("parallel", "parallel")),
    )(y, scale, shift)


# ---------------------------------------------------------------------------
# Parameter / wrapper glue
# ---------------------------------------------------------------------------
def _prep_weight(w, cin_pad, cout_pad):
    kh, kw, cin, cout = w.shape
    w9 = jnp.zeros((9, cin_pad, cout_pad), jnp.float32)
    w9 = w9.at[:, :cin, :cout].set(w.reshape(9, cin, cout).astype(jnp.float32))
    return w9.astype(MATMUL_DTYPE)


def _finalize_bn(stats, gamma, beta, count, cout):
    """Turn streamed (sum, sum_sq) into a single per-channel scale/shift."""
    cp = stats.shape[-1]
    s = jnp.sum(stats, axis=(0, 1))                       # (2, Cp) f32
    mean = s[0] / count
    var = jnp.maximum(s[1] / count - mean * mean, 0.0)    # biased, like PyTorch
    g = jnp.zeros((cp,), jnp.float32).at[:cout].set(gamma.astype(jnp.float32))
    b = jnp.zeros((cp,), jnp.float32).at[:cout].set(beta.astype(jnp.float32))
    scale = g * lax.rsqrt(var + EPS)
    shift = b - mean * scale
    return scale.reshape(1, cp), shift.reshape(1, cp)


def init_down_params(key, in_channels, out_channels):
    k1, k2, k3, k4 = jax.random.split(key, 4)
    fan1 = 9 * in_channels
    fan2 = 9 * out_channels
    return dict(
        w1=jax.random.normal(k1, (3, 3, in_channels, out_channels), jnp.float32)
        / jnp.sqrt(fan1),
        b1=0.1 * jax.random.normal(k2, (out_channels,), jnp.float32),
        g1=jnp.ones((out_channels,), jnp.float32),
        be1=jnp.zeros((out_channels,), jnp.float32),
        w2=jax.random.normal(k3, (3, 3, out_channels, out_channels), jnp.float32)
        / jnp.sqrt(fan2),
        b2=0.1 * jax.random.normal(k4, (out_channels,), jnp.float32),
        g2=jnp.ones((out_channels,), jnp.float32),
        be2=jnp.zeros((out_channels,), jnp.float32),
    )


@jax.jit
def down_forward(x_nchw, params):
    N, Cin, H, W = x_nchw.shape
    Cout = params["w1"].shape[-1]
    Ho, Wo = H // 2, W // 2
    Cp = _round_up(Cout, LANE)
    count = N * Ho * Wo

    x = jnp.transpose(x_nchw, (0, 2, 3, 1))               # NCHW -> NHWC
    p = maxpool2x2_pad(x)                                 # (N, Ho+2, Wo+2, Cin)

    # conv bias omitted on purpose: it cancels exactly under batch-stat BN.
    w1 = _prep_weight(params["w1"], Cin, Cp)              # (9, Cin, Cp)
    w2 = _prep_weight(params["w2"], Cp, Cp)               # (9, Cp, Cp)

    # conv1 (no input affine); write zero-bordered output for conv2.
    y1, st1 = conv3x3_row(p, w1, None, None,
                          apply_act=False, pad_output=True, out_dtype=ACT_DTYPE)
    scale1, shift1 = _finalize_bn(st1, params["g1"], params["be1"], count, Cout)

    # conv2: BN1+ReLU1 fused onto its input rows as they are read.
    y2, st2 = conv3x3_row(y1, w2, scale1, shift1,
                          apply_act=True, pad_output=False, out_dtype=ACT_DTYPE)
    scale2, shift2 = _finalize_bn(st2, params["g2"], params["be2"], count, Cout)

    out = bn_relu_apply(y2, scale2, shift2)               # (N, Ho, Wo, Cp) f32
    out = out[..., :Cout]                                 # drop channel padding
    return jnp.transpose(out, (0, 3, 1, 2))               # back to NCHW


# ---------------------------------------------------------------------------
# Pure-JAX reference (PyTorch training-mode forward, includes the conv bias)
# ---------------------------------------------------------------------------
def _ref_conv_bn_relu(x_nchw, w, b, g, be):
    y = lax.conv_general_dilated(
        x_nchw, w, (1, 1), "SAME", dimension_numbers=("NCHW", "HWIO", "NCHW"))
    y = y + b[None, :, None, None]
    mean = jnp.mean(y, axis=(0, 2, 3), keepdims=True)
    var = jnp.mean(jnp.square(y - mean), axis=(0, 2, 3), keepdims=True)
    yn = (y - mean) / jnp.sqrt(var + EPS)
    return jnp.maximum(yn * g[None, :, None, None] + be[None, :, None, None], 0.0)


def down_forward_ref(x_nchw, params):
    x = lax.reduce_window(
        x_nchw, -jnp.inf, lax.max, (1, 1, 2, 2), (1, 1, 2, 2), "VALID")
    x = _ref_conv_bn_relu(x, params["w1"], params["b1"], params["g1"], params["be1"])
    x = _ref_conv_bn_relu(x, params["w2"], params["b2"], params["g2"], params["be2"])
    return x


if __name__ == "__main__":
    key = jax.random.PRNGKey(0)
    kx, kp = jax.random.split(key)

    N, Cin, H, W = 2, 4, 16, 16
    Cout = 8
    x = jax.random.normal(kx, (N, Cin, H, W), jnp.float32)   # NCHW, like PyTorch
    params = init_down_params(kp, Cin, Cout)

    out = jax.block_until_ready(down_forward(x, params))
    assert out.shape == (N, Cout, H // 2, W // 2), out.shape

    ref = jax.block_until_ready(down_forward_ref(x, params))
    # bf16 MXU operands + bf16 intermediate storage give ~1e-2 abs error vs the
    # f32 reference; with MATMUL_DTYPE = ACT_DTYPE = float32 this matches 1e-3.
    strict = (MATMUL_DTYPE == jnp.float32) and (ACT_DTYPE == jnp.float32)
    tol = 1e-3 if strict else 3e-2
    err = float(jnp.max(jnp.abs(out - ref)))
    assert jnp.allclose(out, ref, atol=tol, rtol=tol), err

    print("KERNEL_OK")
</pallas_src>

<mosaic_0001>
module attributes {stable_mosaic.version = 11 : i64} {
  func.func @kernel(%arg0: i32, %arg1: i32, %arg2: memref<1x2x16x4xf32, #tpu.memory_space<vmem>>, %arg3: memref<1x1x10x4xf32, #tpu.memory_space<vmem>>) attributes {dimension_semantics = [#tpu.dimension_semantics<parallel>, #tpu.dimension_semantics<parallel>], iteration_bounds = array<i64: 2, 10>, scalar_prefetch = 0 : i64, scratch_operands = 0 : i64, tpu.core_type = #tpu.core_type<tc>, window_params = [{transform_indices = @transform_0, window_bounds = array<i64: 1, 2, 16, 4>}, {transform_indices = @transform_1, window_bounds = array<i64: 1, 1, 10, 4>}]} {
    %c0_i32 = arith.constant 0 : i32
    %0 = arith.cmpi eq, %arg1, %c0_i32 : i32
    %c9_i32 = arith.constant 9 : i32
    %1 = arith.cmpi eq, %arg1, %c9_i32 : i32
    %2 = arith.ori %0, %1 : i1
    %3 = arith.extui %2 : i1 to i32
    %c0_i32_0 = arith.constant 0 : i32
    %4 = arith.cmpi ne, %3, %c0_i32_0 : i32
    scf.if %4 {
      %cst = arith.constant 0.000000e+00 : f32
      %10 = vector.broadcast %cst : f32 to vector<1x1x10x4xf32>
      %c0 = arith.constant 0 : index
      %c0_3 = arith.constant 0 : index
      %c0_4 = arith.constant 0 : index
      %c0_5 = arith.constant 0 : index
      %11 = vector.load %arg3[%c0, %c0_3, %c0_4, %c0_5] : memref<1x1x10x4xf32, #tpu.memory_space<vmem>>, vector<1x1x10x4xf32>
      tpu.vector_store %arg3[%c0, %c0_3, %c0_4, %c0_5], %10 {strides = array<i32>} : memref<1x1x10x4xf32, #tpu.memory_space<vmem>>, vector<1x1x10x4xf32>,
    } else {
    }
    %c0_i32_1 = arith.constant 0 : i32
    %5 = arith.cmpi sgt, %arg1, %c0_i32_1 : i32
    %c8_i32 = arith.constant 8 : i32
    %6 = arith.cmpi sle, %arg1, %c8_i32 : i32
    %7 = arith.andi %5, %6 : i1
    %8 = arith.extui %7 : i1 to i32
    %c0_i32_2 = arith.constant 0 : i32
    %9 = arith.cmpi ne, %8, %c0_i32_2 : i32
    scf.if %9 {
      %c0 = arith.constant 0 : index
      %c0_3 = arith.constant 0 : index
      %c0_4 = arith.constant 0 : index
      %c0_5 = arith.constant 0 : index
      %10 = tpu.strided_load %arg2[%c0, %c0_3, %c0_4, %c0_5] {strides = array<i32: 1, 1, 2, 1>} : memref<1x2x16x4xf32, #tpu.memory_space<vmem>>, vector<1x1x8x4xf32>
      %c0_6 = arith.constant 0 : index
      %c0_7 = arith.constant 0 : index
      %c1 = arith.constant 1 : index
      %c0_8 = arith.constant 0 : index
      %11 = tpu.strided_load %arg2[%c0_6, %c0_7, %c1, %c0_8] {strides = array<i32: 1, 1, 2, 1>} : memref<1x2x16x4xf32, #tpu.memory_space<vmem>>, vector<1x1x8x4xf32>
      %c0_9 = arith.constant 0 : index
      %c1_10 = arith.constant 1 : index
      %c0_11 = arith.constant 0 : index
      %c0_12 = arith.constant 0 : index
      %12 = tpu.strided_load %arg2[%c0_9, %c1_10, %c0_11, %c0_12] {strides = array<i32: 1, 1, 2, 1>} : memref<1x2x16x4xf32, #tpu.memory_space<vmem>>, vector<1x1x8x4xf32>
      %c0_13 = arith.constant 0 : index
      %c1_14 = arith.constant 1 : index
      %c1_15 = arith.constant 1 : index
      %c0_16 = arith.constant 0 : index
      %13 = tpu.strided_load %arg2[%c0_13, %c1_14, %c1_15, %c0_16] {strides = array<i32: 1, 1, 2, 1>} : memref<1x2x16x4xf32, #tpu.memory_space<vmem>>, vector<1x1x8x4xf32>
      %14 = arith.maximumf %10, %11 : vector<1x1x8x4xf32>
      %15 = arith.maximumf %12, %13 : vector<1x1x8x4xf32>
      %16 = arith.maximumf %14, %15 : vector<1x1x8x4xf32>
      %cst = arith.constant 0.000000e+00 : f32
      %17 = vector.broadcast %cst : f32 to vector<1x1x1x4xf32>
      %c0_17 = arith.constant 0 : index
      %c0_18 = arith.constant 0 : index
      %c0_19 = arith.constant 0 : index
      %c0_20 = arith.constant 0 : index
      %18 = vector.load %arg3[%c0_17, %c0_18, %c0_19, %c0_20] : memref<1x1x10x4xf32, #tpu.memory_space<vmem>>, vector<1x1x1x4xf32>
      tpu.vector_store %arg3[%c0_17, %c0_18, %c0_19, %c0_20], %17 {strides = array<i32>} : memref<1x1x10x4xf32, #tpu.memory_space<vmem>>, vector<1x1x1x4xf32>,
      %c0_21 = arith.constant 0 : index
      %c0_22 = arith.constant 0 : index
      %c9 = arith.constant 9 : index
      %c0_23 = arith.constant 0 : index
      %19 = vector.load %arg3[%c0_21, %c0_22, %c9, %c0_23] : memref<1x1x10x4xf32, #tpu.memory_space<vmem>>, vector<1x1x1x4xf32>
      tpu.vector_store %arg3[%c0_21, %c0_22, %c9, %c0_23], %17 {strides = array<i32>} : memref<1x1x10x4xf32, #tpu.memory_space<vmem>>, vector<1x1x1x4xf32>,
      %c0_24 = arith.constant 0 : index
      %c0_25 = arith.constant 0 : index
      %c1_26 = arith.constant 1 : index
      %c0_27 = arith.constant 0 : index
      %20 = vector.load %arg3[%c0_24, %c0_25, %c1_26, %c0_27] : memref<1x1x10x4xf32, #tpu.memory_space<vmem>>, vector<1x1x8x4xf32>
      tpu.vector_store %arg3[%c0_24, %c0_25, %c1_26, %c0_27], %16 {strides = array<i32>} : memref<1x1x10x4xf32, #tpu.memory_space<vmem>>, vector<1x1x8x4xf32>,
    } else {
    }
    return
  }
  func.func @transform_0(%arg0: i32, %arg1: i32) -> (i32, i32, i32, i32) {
    %c1_i32 = arith.constant 1 : i32
    %0 = arith.subi %arg1, %c1_i32 : i32
    %c0_i32 = arith.constant 0 : i32
    %c7_i32 = arith.constant 7 : i32
    %1 = arith.maxsi %c0_i32, %0 : i32
    %2 = arith.minsi %c7_i32, %1 : i32
    %c0_i32_0 = arith.constant 0 : i32
    %c0_i32_1 = arith.constant 0 : i32
    %c0_i32_2 = arith.constant 0 : i32
    return %arg0, %2, %c0_i32_0, %c0_i32_1 : i32, i32, i32, i32
  }
  func.func @transform_1(%arg0: i32, %arg1: i32) -> (i32, i32, i32, i32) {
    %c0_i32 = arith.constant 0 : i32
    %c0_i32_0 = arith.constant 0 : i32
    %c0_i32_1 = arith.constant 0 : i32
    return %arg0, %arg1, %c0_i32, %c0_i32_0 : i32, i32, i32, i32
  }
}

module attributes {stable_mosaic.version = 11 : i64} {
  func.func @kernel(%arg0: i32, %arg1: i32, %arg2: memref<1x1x10x4xf32, #tpu.memory_space<vmem>>, %arg3: memref<1x1x10x4xf32, #tpu.memory_space<vmem>>, %arg4: memref<1x1x10x4xf32, #tpu.memory_space<vmem>>, %arg5: memref<9x4x128xbf16, #tpu.memory_space<vmem>>, %arg6: memref<1x1x10x128xbf16, #tpu.memory_space<vmem>>, %arg7: memref<1x1x2x128xf32, #tpu.memory_space<vmem>>) attributes {dimension_semantics = [#tpu.dimension_semantics<parallel>, #tpu.dimension_semantics<parallel>], iteration_bounds = array<i64: 2, 10>, scalar_prefetch = 0 : i64, scratch_operands = 0 : i64, tpu.core_type = #tpu.core_type<tc>, window_params = [{transform_indices = @transform_0, window_bounds = array<i64: 1, 1, 10, 4>}, {transform_indices = @transform_1, window_bounds = array<i64: 1, 1, 10, 4>}, {transform_indices = @transform_2, window_bounds = array<i64: 1, 1, 10, 4>}, {pipeline_mode = #tpu.pipeline_mode<synchronous>, transform_indices = @transform_3, window_bounds = array<i64: 9, 4, 128>}, {transform_indices = @transform_4, window_bounds = array<i64: 1, 1, 10, 128>}, {transform_indices = @transform_5, window_bounds = array<i64: 1, 1, 2, 128>}]} {
    %c0_i32 = arith.constant 0 : i32
    %0 = arith.cmpi eq, %arg1, %c0_i32 : i32
    %c9_i32 = arith.constant 9 : i32
    %1 = arith.cmpi eq, %arg1, %c9_i32 : i32
    %2 = arith.ori %0, %1 : i1
    %3 = arith.extui %2 : i1 to i32
    %c0_i32_0 = arith.constant 0 : i32
    %4 = arith.cmpi ne, %3, %c0_i32_0 : i32
    scf.if %4 {
      %cst = arith.constant 0.000000e+00 : bf16
      %8 = vector.broadcast %cst : bf16 to vector<1x1x10x128xbf16>
      %c0 = arith.constant 0 : index
      %c0_2 = arith.constant 0 : index
      %c0_3 = arith.constant 0 : index
      %c0_4 = arith.constant 0 : index
      %9 = vector.load %arg6[%c0, %c0_2, %c0_3, %c0_4] : memref<1x1x10x128xbf16, #tpu.memory_space<vmem>>, vector<1x1x10x128xbf16>
      tpu.vector_store %arg6[%c0, %c0_2, %c0_3, %c0_4], %8 {strides = array<i32>} : memref<1x1x10x128xbf16, #tpu.memory_space<vmem>>, vector<1x1x10x128xbf16>,
      %cst_5 = arith.constant 0.000000e+00 : f32
      %10 = vector.broadcast %cst_5 : f32 to vector<1x1x2x128xf32>
      %c0_6 = arith.constant 0 : index
      %c0_7 = arith.constant 0 : index
      %c0_8 = arith.constant 0 : index
      %c0_9 = arith.constant 0 : index
      %11 = vector.load %arg7[%c0_6, %c0_7, %c0_8, %c0_9] : memref<1x1x2x128xf32, #tpu.memory_space<vmem>>, vector<1x1x2x128xf32>
      tpu.vector_store %arg7[%c0_6, %c0_7, %c0_8, %c0_9], %10 {strides = array<i32>} : memref<1x1x2x128xf32, #tpu.memory_space<vmem>>, vector<1x1x2x128xf32>,
    } else {
    }
    %true = arith.constant true
    %5 = arith.xori %2, %true : i1
    %6 = arith.extui %5 : i1 to i32
    %c0_i32_1 = arith.constant 0 : i32
    %7 = arith.cmpi ne, %6, %c0_i32_1 : i32
    scf.if %7 {
      %c0 = arith.constant 0 : index
      %c0_2 = arith.constant 0 : index
      %c0_3 = arith.constant 0 : index
      %c0_4 = arith.constant 0 : index
      %8 = vector.load %arg2[%c0, %c0_2, %c0_3, %c0_4] : memref<1x1x10x4xf32, #tpu.memory_space<vmem>>, vector<1x1x10x4xf32>
      %9 = vector.shape_cast %8 : vector<1x1x10x4xf32> to vector<10x4xf32>
      %10 = arith.truncf %9 : vector<10x4xf32> to vector<10x4xbf16>
      %c0_5 = arith.constant 0 : index
      %c0_6 = arith.constant 0 : index
      %c0_7 = arith.constant 0 : index
      %c0_8 = arith.constant 0 : index
      %11 = vector.load %arg3[%c0_5, %c0_6, %c0_7, %c0_8] : memref<1x1x10x4xf32, #tpu.memory_space<vmem>>, vector<1x1x10x4xf32>
      %12 = vector.shape_cast %11 : vector<1x1x10x4xf32> to vector<10x4xf32>
      %13 = arith.truncf %12 : vector<10x4xf32> to vector<10x4xbf16>
      %c0_9 = arith.constant 0 : index
      %c0_10 = arith.constant 0 : index
      %c0_11 = arith.constant 0 : index
      %c0_12 = arith.constant 0 : index
      %14 = vector.load %arg4[%c0_9, %c0_10, %c0_11, %c0_12] : memref<1x1x10x4xf32, #tpu.memory_space<vmem>>, vector<1x1x10x4xf32>
      %15 = vector.shape_cast %14 : vector<1x1x10x4xf32> to vector<10x4xf32>
      %16 = arith.truncf %15 : vector<10x4xf32> to vector<10x4xbf16>
      %cst = arith.constant 0.000000e+00 : f32
      %17 = vector.broadcast %cst : f32 to vector<8x128xf32>
      %18 = vector.extract_strided_slice %10 {offsets = [0, 0], sizes = [8, 4], strides = [1, 1]} : vector<10x4xbf16> to vector<8x4xbf16>
      %c0_13 = arith.constant 0 : index
      %c0_14 = arith.constant 0 : index
      %c0_15 = arith.constant 0 : index
      %19 = vector.load %arg5[%c0_13, %c0_14, %c0_15] : memref<9x4x128xbf16, #tpu.memory_space<vmem>>, vector<1x4x128xbf16>
      %20 = vector.shape_cast %19 : vector<1x4x128xbf16> to vector<4x128xbf16>
      %cst_16 = arith.constant dense<0.000000e+00> : vector<8x128xf32>
      %21 = tpu.matmul %18, %20, %cst_16 {dimension_numbers = #tpu.dot_dimension_numbers<[1], [0], [0], [1], [0, 0, 1, 1], [], []>} : vector<8x4xbf16>, vector<4x128xbf16>, vector<8x128xf32> -> vector<8x128xf32>
      %22 = arith.addf %17, %21 : vector<8x128xf32>
      %23 = vector.extract_strided_slice %10 {offsets = [1, 0], sizes = [8, 4], strides = [1, 1]} : vector<10x4xbf16> to vector<8x4xbf16>
      %c1 = arith.constant 1 : index
      %c0_17 = arith.constant 0 : index
      %c0_18 = arith.constant 0 : index
      %24 = vector.load %arg5[%c1, %c0_17, %c0_18] : memref<9x4x128xbf16, #tpu.memory_space<vmem>>, vector<1x4x128xbf16>
      %25 = vector.shape_cast %24 : vector<1x4x128xbf16> to vector<4x128xbf16>
      %cst_19 = arith.constant dense<0.000000e+00> : vector<8x128xf32>
      %26 = tpu.matmul %23, %25, %cst_19 {dimension_numbers = #tpu.dot_dimension_numbers<[1], [0], [0], [1], [0, 0, 1, 1], [], []>} : vector<8x4xbf16>, vector<4x128xbf16>, vector<8x128xf32> -> vector<8x128xf32>
      %27 = arith.addf %22, %26 : vector<8x128xf32>
      %28 = vector.extract_strided_slice %10 {offsets = [2, 0], sizes = [8, 4], strides = [1, 1]} : vector<10x4xbf16> to vector<8x4xbf16>
      %c2 = arith.constant 2 : index
      %c0_20 = arith.constant 0 : index
      %c0_21 = arith.constant 0 : index
      %29 = vector.load %arg5[%c2, %c0_20, %c0_21] : memref<9x4x128xbf16, #tpu.memory_space<vmem>>, vector<1x4x128xbf16>
      %30 = vector.shape_cast %29 : vector<1x4x128xbf16> to vector<4x128xbf16>
      %cst_22 = arith.constant dense<0.000000e+00> : vector<8x128xf32>
      %31 = tpu.matmul %28, %30, %cst_22 {dimension_numbers = #tpu.dot_dimension_numbers<[1], [0], [0], [1], [0, 0, 1, 1], [], []>} : vector<8x4xbf16>, vector<4x128xbf16>, vector<8x128xf32> -> vector<8x128xf32>
      %32 = arith.addf %27, %31 : vector<8x128xf32>
      %33 = vector.extract_strided_slice %13 {offsets = [0, 0], sizes = [8, 4], strides = [1, 1]} : vector<10x4xbf16> to vector<8x4xbf16>
      %c3 = arith.constant 3 : index
      %c0_23 = arith.constant 0 : index
      %c0_24 = arith.constant 0 : index
      %34 = vector.load %arg5[%c3, %c0_23, %c0_24] : memref<9x4x128xbf16, #tpu.memory_space<vmem>>, vector<1x4x128xbf16>
      %35 = vector.shape_cast %34 : vector<1x4x128xbf16> to vector<4x128xbf16>
      %cst_25 = arith.constant dense<0.000000e+00> : vector<8x128xf32>
      %36 = tpu.matmul %33, %35, %cst_25 {dimension_numbers = #tpu.dot_dimension_numbers<[1], [0], [0], [1], [0, 0, 1, 1], [], []>} : vector<8x4xbf16>, vector<4x128xbf16>, vector<8x128xf32> -> vector<8x128xf32>
      %37 = arith.addf %32, %36 : vector<8x128xf32>
      %38 = vector.extract_strided_slice %13 {offsets = [1, 0], sizes = [8, 4], strides = [1, 1]} : vector<10x4xbf16> to vector<8x4xbf16>
      %c4 = arith.constant 4 : index
      %c0_26 = arith.constant 0 : index
      %c0_27 = arith.constant 0 : index
      %39 = vector.load %arg5[%c4, %c0_26, %c0_27] : memref<9x4x128xbf16, #tpu.memory_space<vmem>>, vector<1x4x128xbf16>
      %40 = vector.shape_cast %39 : vector<1x4x128xbf16> to vector<4x128xbf16>
      %cst_28 = arith.constant dense<0.000000e+00> : vector<8x128xf32>
      %41 = tpu.matmul %38, %40, %cst_28 {dimension_numbers = #tpu.dot_dimension_numbers<[1], [0], [0], [1], [0, 0, 1, 1], [], []>} : vector<8x4xbf16>, vector<4x128xbf16>, vector<8x128xf32> -> vector<8x128xf32>
      %42 = arith.addf %37, %41 : vector<8x128xf32>
      %43 = vector.extract_strided_slice %13 {offsets = [2, 0], sizes = [8, 4], strides = [1, 1]} : vector<10x4xbf16> to vector<8x4xbf16>
      %c5 = arith.constant 5 : index
      %c0_29 = arith.constant 0 : index
      %c0_30 = arith.constant 0 : index
      %44 = vector.load %arg5[%c5, %c0_29, %c0_30] : memref<9x4x128xbf16, #tpu.memory_space<vmem>>, vector<1x4x128xbf16>
      %45 = vector.shape_cast %44 : vector<1x4x128xbf16> to vector<4x128xbf16>
      %cst_31 = arith.constant dense<0.000000e+00> : vector<8x128xf32>
      %46 = tpu.matmul %43, %45, %cst_31 {dimension_numbers = #tpu.dot_dimension_numbers<[1], [0], [0], [1], [0, 0, 1, 1], [], []>} : vector<8x4xbf16>, vector<4x128xbf16>, vector<8x128xf32> -> vector<8x128xf32>
      %47 = arith.addf %42, %46 : vector<8x128xf32>
      %48 = vector.extract_strided_slice %16 {offsets = [0, 0], sizes = [8, 4], strides = [1, 1]} : vector<10x4xbf16> to vector<8x4xbf16>
      %c6 = arith.constant 6 : index
      %c0_32 = arith.constant 0 : index
      %c0_33 = arith.constant 0 : index
      %49 = vector.load %arg5[%c6, %c0_32, %c0_33] : memref<9x4x128xbf16, #tpu.memory_space<vmem>>, vector<1x4x128xbf16>
      %50 = vector.shape_cast %49 : vector<1x4x128xbf16> to vector<4x128xbf16>
      %cst_34 = arith.constant dense<0.000000e+00> : vector<8x128xf32>
      %51 = tpu.matmul %48, %50, %cst_34 {dimension_numbers = #tpu.dot_dimension_numbers<[1], [0], [0], [1], [0, 0, 1, 1], [], []>} : vector<8x4xbf16>, vector<4x128xbf16>, vector<8x128xf32> -> vector<8x128xf32>
      %52 = arith.addf %47, %51 : vector<8x128xf32>
      %53 = vector.extract_strided_slice %16 {offsets = [1, 0], sizes = [8, 4], strides = [1, 1]} : vector<10x4xbf16> to vector<8x4xbf16>
      %c7 = arith.constant 7 : index
      %c0_35 = arith.constant 0 : index
      %c0_36 = arith.constant 0 : index
      %54 = vector.load %arg5[%c7, %c0_35, %c0_36] : memref<9x4x128xbf16, #tpu.memory_space<vmem>>, vector<1x4x128xbf16>
      %55 = vector.shape_cast %54 : vector<1x4x128xbf16> to vector<4x128xbf16>
      %cst_37 = arith.constant dense<0.000000e+00> : vector<8x128xf32>
      %56 = tpu.matmul %53, %55, %cst_37 {dimension_numbers = #tpu.dot_dimension_numbers<[1], [0], [0], [1], [0, 0, 1, 1], [], []>} : vector<8x4xbf16>, vector<4x128xbf16>, vector<8x128xf32> -> vector<8x128xf32>
      %57 = arith.addf %52, %56 : vector<8x128xf32>
      %58 = vector.extract_strided_slice %16 {offsets = [2, 0], sizes = [8, 4], strides = [1, 1]} : vector<10x4xbf16> to vector<8x4xbf16>
      %c8 = arith.constant 8 : index
      %c0_38 = arith.constant 0 : index
      %c0_39 = arith.constant 0 : index
      %59 = vector.load %arg5[%c8, %c0_38, %c0_39] : memref<9x4x128xbf16, #tpu.memory_space<vmem>>, vector<1x4x128xbf16>
      %60 = vector.shape_cast %59 : vector<1x4x128xbf16> to vector<4x128xbf16>
      %cst_40 = arith.constant dense<0.000000e+00> : vector<8x128xf32>
      %61 = tpu.matmul %58, %60, %cst_40 {dimension_numbers = #tpu.dot_dimension_numbers<[1], [0], [0], [1], [0, 0, 1, 1], [], []>} : vector<8x4xbf16>, vector<4x128xbf16>, vector<8x128xf32> -> vector<8x128xf32>
      %62 = arith.addf %57, %61 : vector<8x128xf32>
      %cst_41 = arith.constant dense<0.000000e+00> : vector<128xf32>
      %63 = vector.multi_reduction <add>, %62, %cst_41 [0] : vector<8x128xf32> to vector<128xf32>
      %64 = vector.shape_cast %63 : vector<128xf32> to vector<1x128xf32>
      %65 = vector.shape_cast %64 : vector<1x128xf32> to vector<1x1x1x128xf32>
      %c0_42 = arith.constant 0 : index
      %c0_43 = arith.constant 0 : index
      %c0_44 = arith.constant 0 : index
      %c0_45 = arith.constant 0 : index
      %66 = vector.load %arg7[%c0_42, %c0_43, %c0_44, %c0_45] : memref<1x1x2x128xf32, #tpu.memory_space<vmem>>, vector<1x1x1x128xf32>
      tpu.vector_store %arg7[%c0_42, %c0_43, %c0_44, %c0_45], %65 {strides = array<i32>} : memref<1x1x2x128xf32, #tpu.memory_space<vmem>>, vector<1x1x1x128xf32>,
      %67 = arith.mulf %62, %62 : vector<8x128xf32>
      %cst_46 = arith.constant dense<0.000000e+00> : vector<128xf32>
      %68 = vector.multi_reduction <add>, %67, %cst_46 [0] : vector<8x128xf32> to vector<128xf32>
      %69 = vector.shape_cast %68 : vector<128xf32> to vector<1x128xf32>
      %70 = vector.shape_cast %69 : vector<1x128xf32> to vector<1x1x1x128xf32>
      %c0_47 = arith.constant 0 : index
      %c0_48 = arith.constant 0 : index
      %c1_49 = arith.constant 1 : index
      %c0_50 = arith.constant 0 : index
      %71 = vector.load %arg7[%c0_47, %c0_48, %c1_49, %c0_50] : memref<1x1x2x128xf32, #tpu.memory_space<vmem>>, vector<1x1x1x128xf32>
      tpu.vector_store %arg7[%c0_47, %c0_48, %c1_49, %c0_50], %70 {strides = array<i32>} : memref<1x1x2x128xf32, #tpu.memory_space<vmem>>, vector<1x1x1x128xf32>,
      %cst_51 = arith.constant 0.000000e+00 : bf16
      %72 = vector.broadcast %cst_51 : bf16 to vector<1x1x1x128xbf16>
      %c0_52 = arith.constant 0 : index
      %c0_53 = arith.constant 0 : index
      %c0_54 = arith.constant 0 : index
      %c0_55 = arith.constant 0 : index
      %73 = vector.load %arg6[%c0_52, %c0_53, %c0_54, %c0_55] : memref<1x1x10x128xbf16, #tpu.memory_space<vmem>>, vector<1x1x1x128xbf16>
      tpu.vector_store %arg6[%c0_52, %c0_53, %c0_54, %c0_55], %72 {strides = array<i32>} : memref<1x1x10x128xbf16, #tpu.memory_space<vmem>>, vector<1x1x1x128xbf16>,
      %c0_56 = arith.constant 0 : index
      %c0_57 = arith.constant 0 : index
      %c9 = arith.constant 9 : index
      %c0_58 = arith.constant 0 : index
      %74 = vector.load %arg6[%c0_56, %c0_57, %c9, %c0_58] : memref<1x1x10x128xbf16, #tpu.memory_space<vmem>>, vector<1x1x1x128xbf16>
      tpu.vector_store %arg6[%c0_56, %c0_57, %c9, %c0_58], %72 {strides = array<i32>} : memref<1x1x10x128xbf16, #tpu.memory_space<vmem>>, vector<1x1x1x128xbf16>,
      %75 = arith.truncf %62 : vector<8x128xf32> to vector<8x128xbf16>
      %76 = vector.shape_cast %75 : vector<8x128xbf16> to vector<1x1x8x128xbf16>
      %c0_59 = arith.constant 0 : index
      %c0_60 = arith.constant 0 : index
      %c1_61 = arith.constant 1 : index
      %c0_62 = arith.constant 0 : index
      %77 = vector.load %arg6[%c0_59, %c0_60, %c1_61, %c0_62] : memref<1x1x10x128xbf16, #tpu.memory_space<vmem>>, vector<1x1x8x128xbf16>
      tpu.vector_store %arg6[%c0_59, %c0_60, %c1_61, %c0_62], %76 {strides = array<i32>} : memref<1x1x10x128xbf16, #tpu.memory_space<vmem>>, vector<1x1x8x128xbf16>,
    } else {
    }
    return
  }
  func.func @transform_0(%arg0: i32, %arg1: i32) -> (i32, i32, i32, i32) {
    %c1_i32 = arith.constant 1 : i32
    %0 = arith.subi %arg1, %c1_i32 : i32
    %c0_i32 = arith.constant 0 : i32
    %c9_i32 = arith.constant 9 : i32
    %1 = arith.maxsi %c0_i32, %0 : i32
    %2 = arith.minsi %c9_i32, %1 : i32
    %c0_i32_0 = arith.constant 0 : i32
    %c0_i32_1 = arith.constant 0 : i32
    %c0_i32_2 = arith.constant 0 : i32
    return %arg0, %2, %c0_i32_0, %c0_i32_1 : i32, i32, i32, i32
  }
  func.func @transform_1(%arg0: i32, %arg1: i32) -> (i32, i32, i32, i32) {
    %c0_i32 = arith.constant 0 : i32
    %c0_i32_0 = arith.constant 0 : i32
    %c0_i32_1 = arith.constant 0 : i32
    return %arg0, %arg1, %c0_i32, %c0_i32_0 : i32, i32, i32, i32
  }
  func.func @transform_2(%arg0: i32, %arg1: i32) -> (i32, i32, i32, i32) {
    %c1_i32 = arith.constant 1 : i32
    %0 = arith.addi %arg1, %c1_i32 : i32
    %c0_i32 = arith.constant 0 : i32
    %c9_i32 = arith.constant 9 : i32
    %1 = arith.maxsi %c0_i32, %0 : i32
    %2 = arith.minsi %c9_i32, %1 : i32
    %c0_i32_0 = arith.constant 0 : i32
    %c0_i32_1 = arith.constant 0 : i32
    %c0_i32_2 = arith.constant 0 : i32
    return %arg0, %2, %c0_i32_0, %c0_i32_1 : i32, i32, i32, i32
  }
  func.func @transform_3(%arg0: i32, %arg1: i32) -> (i32, i32, i32) {
    %c0_i32 = arith.constant 0 : i32
    %c0_i32_0 = arith.constant 0 : i32
    %c0_i32_1 = arith.constant 0 : i32
    %c0_i32_2 = arith.constant 0 : i32
    return %c0_i32, %c0_i32_0, %c0_i32_1 : i32, i32, i32
  }
  func.func @transform_4(%arg0: i32, %arg1: i32) -> (i32, i32, i32, i32) {
    %c0_i32 = arith.constant 0 : i32
    %c0_i32_0 = arith.constant 0 : i32
    %c0_i32_1 = arith.constant 0 : i32
    return %arg0, %arg1, %c0_i32, %c0_i32_0 : i32, i32, i32, i32
  }
  func.func @transform_5(%arg0: i32, %arg1: i32) -> (i32, i32, i32, i32) {
    %c0_i32 = arith.constant 0 : i32
    %c0_i32_0 = arith.constant 0 : i32
    %c0_i32_1 = arith.constant 0 : i32
    return %arg0, %arg1, %c0_i32, %c0_i32_0 : i32, i32, i32, i32
  }
}

module attributes {stable_mosaic.version = 11 : i64} {
  func.func @kernel(%arg0: i32, %arg1: i32, %arg2: memref<1x1x10x128xbf16, #tpu.memory_space<vmem>>, %arg3: memref<1x1x10x128xbf16, #tpu.memory_space<vmem>>, %arg4: memref<1x1x10x128xbf16, #tpu.memory_space<vmem>>, %arg5: memref<9x128x128xbf16, #tpu.memory_space<vmem>>, %arg6: memref<1x128xf32, #tpu.memory_space<vmem>>, %arg7: memref<1x128xf32, #tpu.memory_space<vmem>>, %arg8: memref<1x1x8x128xbf16, #tpu.memory_space<vmem>>, %arg9: memref<1x1x2x128xf32, #tpu.memory_space<vmem>>) attributes {dimension_semantics = [#tpu.dimension_semantics<parallel>, #tpu.dimension_semantics<parallel>], iteration_bounds = array<i64: 2, 8>, scalar_prefetch = 0 : i64, scratch_operands = 0 : i64, tpu.core_type = #tpu.core_type<tc>, window_params = [{transform_indices = @transform_0, window_bounds = array<i64: 1, 1, 10, 128>}, {transform_indices = @transform_1, window_bounds = array<i64: 1, 1, 10, 128>}, {transform_indices = @transform_2, window_bounds = array<i64: 1, 1, 10, 128>}, {pipeline_mode = #tpu.pipeline_mode<synchronous>, transform_indices = @transform_3, window_bounds = array<i64: 9, 128, 128>}, {pipeline_mode = #tpu.pipeline_mode<synchronous>, transform_indices = @transform_4, window_bounds = array<i64: 1, 128>}, {pipeline_mode = #tpu.pipeline_mode<synchronous>, transform_indices = @transform_5, window_bounds = array<i64: 1, 128>}, {transform_indices = @transform_6, window_bounds = array<i64: 1, 1, 8, 128>}, {transform_indices = @transform_7, window_bounds = array<i64: 1, 1, 2, 128>}]} {
    %c0 = arith.constant 0 : index
    %c0_0 = arith.constant 0 : index
    %0 = vector.load %arg6[%c0, %c0_0] : memref<1x128xf32, #tpu.memory_space<vmem>>, vector<1x128xf32>
    %c0_1 = arith.constant 0 : index
    %c0_2 = arith.constant 0 : index
    %1 = vector.load %arg7[%c0_1, %c0_2] : memref<1x128xf32, #tpu.memory_space<vmem>>, vector<1x128xf32>
    %2 = tpu.iota {dimensions = array<i32: 0>} : vector<10x1xi32>
    %c0_i32 = arith.constant 0 : i32
    %3 = vector.broadcast %c0_i32 : i32 to vector<10x1xi32>
    %4 = arith.cmpi sgt, %2, %3 : vector<10x1xi32>
    %c9_i32 = arith.constant 9 : i32
    %5 = vector.broadcast %c9_i32 : i32 to vector<10x1xi32>
    %6 = arith.cmpi slt, %2, %5 : vector<10x1xi32>
    %7 = arith.andi %4, %6 : vector<10x1xi1>
    %8 = arith.extui %7 : vector<10x1xi1> to vector<10x1xi32>
    %9 = arith.sitofp %8 : vector<10x1xi32> to vector<10x1xf32>
    %c0_3 = arith.constant 0 : index
    %c0_4 = arith.constant 0 : index
    %c0_5 = arith.constant 0 : index
    %c0_6 = arith.constant 0 : index
    %10 = vector.load %arg2[%c0_3, %c0_4, %c0_5, %c0_6] : memref<1x1x10x128xbf16, #tpu.memory_space<vmem>>, vector<1x1x10x128xbf16>
    %11 = vector.shape_cast %10 : vector<1x1x10x128xbf16> to vector<10x128xbf16>
    %c0_i32_7 = arith.constant 0 : i32
    %12 = arith.addi %arg1, %c0_i32_7 : i32
    %c0_i32_8 = arith.constant 0 : i32
    %13 = arith.subi %12, %c0_i32_8 : i32
    %c1_i32 = arith.constant 1 : i32
    %14 = arith.cmpi sge, %13, %c1_i32 : i32
    %c8_i32 = arith.constant 8 : i32
    %15 = arith.cmpi sle, %13, %c8_i32 : i32
    %16 = arith.andi %14, %15 : i1
    %17 = arith.extui %16 : i1 to i32
    %18 = arith.sitofp %17 : i32 to f32
    %19 = arith.extf %11 : vector<10x128xbf16> to vector<10x128xf32>
    %20 = vector.broadcast %0 : vector<1x128xf32> to vector<10x128xf32>
    %21 = arith.mulf %19, %20 : vector<10x128xf32>
    %22 = vector.broadcast %1 : vector<1x128xf32> to vector<10x128xf32>
    %23 = arith.addf %21, %22 : vector<10x128xf32>
    %cst = arith.constant 0.000000e+00 : f32
    %24 = vector.broadcast %cst : f32 to vector<10x128xf32>
    %25 = arith.maximumf %23, %24 : vector<10x128xf32>
    %26 = vector.broadcast %9 : vector<10x1xf32> to vector<10x128xf32>
    %27 = arith.mulf %25, %26 : vector<10x128xf32>
    %28 = vector.broadcast %18 : f32 to vector<10x128xf32>
    %29 = arith.mulf %27, %28 : vector<10x128xf32>
    %30 = arith.truncf %29 : vector<10x128xf32> to vector<10x128xbf16>
    %c0_9 = arith.constant 0 : index
    %c0_10 = arith.constant 0 : index
    %c0_11 = arith.constant 0 : index
    %c0_12 = arith.constant 0 : index
    %31 = vector.load %arg3[%c0_9, %c0_10, %c0_11, %c0_12] : memref<1x1x10x128xbf16, #tpu.memory_space<vmem>>, vector<1x1x10x128xbf16>
    %32 = vector.shape_cast %31 : vector<1x1x10x128xbf16> to vector<10x128xbf16>
    %c1_i32_13 = arith.constant 1 : i32
    %33 = arith.addi %arg1, %c1_i32_13 : i32
    %c0_i32_14 = arith.constant 0 : i32
    %34 = arith.subi %33, %c0_i32_14 : i32
    %c1_i32_15 = arith.constant 1 : i32
    %35 = arith.cmpi sge, %34, %c1_i32_15 : i32
    %c8_i32_16 = arith.constant 8 : i32
    %36 = arith.cmpi sle, %34, %c8_i32_16 : i32
    %37 = arith.andi %35, %36 : i1
    %38 = arith.extui %37 : i1 to i32
    %39 = arith.sitofp %38 : i32 to f32
    %40 = arith.extf %32 : vector<10x128xbf16> to vector<10x128xf32>
    %41 = vector.broadcast %0 : vector<1x128xf32> to vector<10x128xf32>
    %42 = arith.mulf %40, %41 : vector<10x128xf32>
    %43 = vector.broadcast %1 : vector<1x128xf32> to vector<10x128xf32>
    %44 = arith.addf %42, %43 : vector<10x128xf32>
    %cst_17 = arith.constant 0.000000e+00 : f32
    %45 = vector.broadcast %cst_17 : f32 to vector<10x128xf32>
    %46 = arith.maximumf %44, %45 : vector<10x128xf32>
    %47 = vector.broadcast %9 : vector<10x1xf32> to vector<10x128xf32>
    %48 = arith.mulf %46, %47 : vector<10x128xf32>
    %49 = vector.broadcast %39 : f32 to vector<10x128xf32>
    %50 = arith.mulf %48, %49 : vector<10x128xf32>
    %51 = arith.truncf %50 : vector<10x128xf32> to vector<10x128xbf16>
    %c0_18 = arith.constant 0 : index
    %c0_19 = arith.constant 0 : index
    %c0_20 = arith.constant 0 : index
    %c0_21 = arith.constant 0 : index
    %52 = vector.load %arg4[%c0_18, %c0_19, %c0_20, %c0_21] : memref<1x1x10x128xbf16, #tpu.memory_space<vmem>>, vector<1x1x10x128xbf16>
    %53 = vector.shape_cast %52 : vector<1x1x10x128xbf16> to vector<10x128xbf16>
    %c2_i32 = arith.constant 2 : i32
    %54 = arith.addi %arg1, %c2_i32 : i32
    %c0_i32_22 = arith.constant 0 : i32
    %55 = arith.subi %54, %c0_i32_22 : i32
    %c1_i32_23 = arith.constant 1 : i32
    %56 = arith.cmpi sge, %55, %c1_i32_23 : i32
    %c8_i32_24 = arith.constant 8 : i32
    %57 = arith.cmpi sle, %55, %c8_i32_24 : i32
    %58 = arith.andi %56, %57 : i1
    %59 = arith.extui %58 : i1 to i32
    %60 = arith.sitofp %59 : i32 to f32
    %61 = arith.extf %53 : vector<10x128xbf16> to vector<10x128xf32>
    %62 = vector.broadcast %0 : vector<1x128xf32> to vector<10x128xf32>
    %63 = arith.mulf %61, %62 : vector<10x128xf32>
    %64 = vector.broadcast %1 : vector<1x128xf32> to vector<10x128xf32>
    %65 = arith.addf %63, %64 : vector<10x128xf32>
    %cst_25 = arith.constant 0.000000e+00 : f32
    %66 = vector.broadcast %cst_25 : f32 to vector<10x128xf32>
    %67 = arith.maximumf %65, %66 : vector<10x128xf32>
    %68 = vector.broadcast %9 : vector<10x1xf32> to vector<10x128xf32>
    %69 = arith.mulf %67, %68 : vector<10x128xf32>
    %70 = vector.broadcast %60 : f32 to vector<10x128xf32>
    %71 = arith.mulf %69, %70 : vector<10x128xf32>
    %72 = arith.truncf %71 : vector<10x128xf32> to vector<10x128xbf16>
    %cst_26 = arith.constant 0.000000e+00 : f32
    %73 = vector.broadcast %cst_26 : f32 to vector<8x128xf32>
    %74 = vector.extract_strided_slice %30 {offsets = [0, 0], sizes = [8, 128], strides = [1, 1]} : vector<10x128xbf16> to vector<8x128xbf16>
    %c0_27 = arith.constant 0 : index
    %c0_28 = arith.constant 0 : index
    %c0_29 = arith.constant 0 : index
    %75 = vector.load %arg5[%c0_27, %c0_28, %c0_29] : memref<9x128x128xbf16, #tpu.memory_space<vmem>>, vector<1x128x128xbf16>
    %76 = vector.shape_cast %75 : vector<1x128x128xbf16> to vector<128x128xbf16>
    %cst_30 = arith.constant dense<0.000000e+00> : vector<8x128xf32>
    %77 = tpu.matmul %74, %76, %cst_30 {dimension_numbers = #tpu.dot_dimension_numbers<[1], [0], [0], [1], [0, 0, 1, 1], [], []>} : vector<8x128xbf16>, vector<128x128xbf16>, vector<8x128xf32> -> vector<8x128xf32>
    %78 = arith.addf %73, %77 : vector<8x128xf32>
    %79 = vector.extract_strided_slice %30 {offsets = [1, 0], sizes = [8, 128], strides = [1, 1]} : vector<10x128xbf16> to vector<8x128xbf16>
    %c1 = arith.constant 1 : index
    %c0_31 = arith.constant 0 : index
    %c0_32 = arith.constant 0 : index
    %80 = vector.load %arg5[%c1, %c0_31, %c0_32] : memref<9x128x128xbf16, #tpu.memory_space<vmem>>, vector<1x128x128xbf16>
    %81 = vector.shape_cast %80 : vector<1x128x128xbf16> to vector<128x128xbf16>
    %cst_33 = arith.constant dense<0.000000e+00> : vector<8x128xf32>
    %82 = tpu.matmul %79, %81, %cst_33 {dimension_numbers = #tpu.dot_dimension_numbers<[1], [0], [0], [1], [0, 0, 1, 1], [], []>} : vector<8x128xbf16>, vector<128x128xbf16>, vector<8x128xf32> -> vector<8x128xf32>
    %83 = arith.addf %78, %82 : vector<8x128xf32>
    %84 = vector.extract_strided_slice %30 {offsets = [2, 0], sizes = [8, 128], strides = [1, 1]} : vector<10x128xbf16> to vector<8x128xbf16>
    %c2 = arith.constant 2 : index
    %c0_34 = arith.constant 0 : index
    %c0_35 = arith.constant 0 : index
    %85 = vector.load %arg5[%c2, %c0_34, %c0_35] : memref<9x128x128xbf16, #tpu.memory_space<vmem>>, vector<1x128x128xbf16>
    %86 = vector.shape_cast %85 : vector<1x128x128xbf16> to vector<128x128xbf16>
    %cst_36 = arith.constant dense<0.000000e+00> : vector<8x128xf32>
    %87 = tpu.matmul %84, %86, %cst_36 {dimension_numbers = #tpu.dot_dimension_numbers<[1], [0], [0], [1], [0, 0, 1, 1], [], []>} : vector<8x128xbf16>, vector<128x128xbf16>, vector<8x128xf32> -> vector<8x128xf32>
    %88 = arith.addf %83, %87 : vector<8x128xf32>
    %89 = vector.extract_strided_slice %51 {offsets = [0, 0], sizes = [8, 128], strides = [1, 1]} : vector<10x128xbf16> to vector<8x128xbf16>
    %c3 = arith.constant 3 : index
    %c0_37 = arith.constant 0 : index
    %c0_38 = arith.constant 0 : index
    %90 = vector.load %arg5[%c3, %c0_37, %c0_38] : memref<9x128x128xbf16, #tpu.memory_space<vmem>>, vector<1x128x128xbf16>
    %91 = vector.shape_cast %90 : vector<1x128x128xbf16> to vector<128x128xbf16>
    %cst_39 = arith.constant dense<0.000000e+00> : vector<8x128xf32>
    %92 = tpu.matmul %89, %91, %cst_39 {dimension_numbers = #tpu.dot_dimension_numbers<[1], [0], [0], [1], [0, 0, 1, 1], [], []>} : vector<8x128xbf16>, vector<128x128xbf16>, vector<8x128xf32> -> vector<8x128xf32>
    %93 = arith.addf %88, %92 : vector<8x128xf32>
    %94 = vector.extract_strided_slice %51 {offsets = [1, 0], sizes = [8, 128], strides = [1, 1]} : vector<10x128xbf16> to vector<8x128xbf16>
    %c4 = arith.constant 4 : index
    %c0_40 = arith.constant 0 : index
    %c0_41 = arith.constant 0 : index
    %95 = vector.load %arg5[%c4, %c0_40, %c0_41] : memref<9x128x128xbf16, #tpu.memory_space<vmem>>, vector<1x128x128xbf16>
    %96 = vector.shape_cast %95 : vector<1x128x128xbf16> to vector<128x128xbf16>
    %cst_42 = arith.constant dense<0.000000e+00> : vector<8x128xf32>
    %97 = tpu.matmul %94, %96, %cst_42 {dimension_numbers = #tpu.dot_dimension_numbers<[1], [0], [0], [1], [0, 0, 1, 1], [], []>} : vector<8x128xbf16>, vector<128x128xbf16>, vector<8x128xf32> -> vector<8x128xf32>
    %98 = arith.addf %93, %97 : vector<8x128xf32>
    %99 = vector.extract_strided_slice %51 {offsets = [2, 0], sizes = [8, 128], strides = [1, 1]} : vector<10x128xbf16> to vector<8x128xbf16>
    %c5 = arith.constant 5 : index
    %c0_43 = arith.constant 0 : index
    %c0_44 = arith.constant 0 : index
    %100 = vector.load %arg5[%c5, %c0_43, %c0_44] : memref<9x128x128xbf16, #tpu.memory_space<vmem>>, vector<1x128x128xbf16>
    %101 = vector.shape_cast %100 : vector<1x128x128xbf16> to vector<128x128xbf16>
    %cst_45 = arith.constant dense<0.000000e+00> : vector<8x128xf32>
    %102 = tpu.matmul %99, %101, %cst_45 {dimension_numbers = #tpu.dot_dimension_numbers<[1], [0], [0], [1], [0, 0, 1, 1], [], []>} : vector<8x128xbf16>, vector<128x128xbf16>, vector<8x128xf32> -> vector<8x128xf32>
    %103 = arith.addf %98, %102 : vector<8x128xf32>
    %104 = vector.extract_strided_slice %72 {offsets = [0, 0], sizes = [8, 128], strides = [1, 1]} : vector<10x128xbf16> to vector<8x128xbf16>
    %c6 = arith.constant 6 : index
    %c0_46 = arith.constant 0 : index
    %c0_47 = arith.constant 0 : index
    %105 = vector.load %arg5[%c6, %c0_46, %c0_47] : memref<9x128x128xbf16, #tpu.memory_space<vmem>>, vector<1x128x128xbf16>
    %106 = vector.shape_cast %105 : vector<1x128x128xbf16> to vector<128x128xbf16>
    %cst_48 = arith.constant dense<0.000000e+00> : vector<8x128xf32>
    %107 = tpu.matmul %104, %106, %cst_48 {dimension_numbers = #tpu.dot_dimension_numbers<[1], [0], [0], [1], [0, 0, 1, 1], [], []>} : vector<8x128xbf16>, vector<128x128xbf16>, vector<8x128xf32> -> vector<8x128xf32>
    %108 = arith.addf %103, %107 : vector<8x128xf32>
    %109 = vector.extract_strided_slice %72 {offsets = [1, 0], sizes = [8, 128], strides = [1, 1]} : vector<10x128xbf16> to vector<8x128xbf16>
    %c7 = arith.constant 7 : index
    %c0_49 = arith.constant 0 : index
    %c0_50 = arith.constant 0 : index
    %110 = vector.load %arg5[%c7, %c0_49, %c0_50] : memref<9x128x128xbf16, #tpu.memory_space<vmem>>, vector<1x128x128xbf16>
    %111 = vector.shape_cast %110 : vector<1x128x128xbf16> to vector<128x128xbf16>
    %cst_51 = arith.constant dense<0.000000e+00> : vector<8x128xf32>
    %112 = tpu.matmul %109, %111, %cst_51 {dimension_numbers = #tpu.dot_dimension_numbers<[1], [0], [0], [1], [0, 0, 1, 1], [], []>} : vector<8x128xbf16>, vector<128x128xbf16>, vector<8x128xf32> -> vector<8x128xf32>
    %113 = arith.addf %108, %112 : vector<8x128xf32>
    %114 = vector.extract_strided_slice %72 {offsets = [2, 0], sizes = [8, 128], strides = [1, 1]} : vector<10x128xbf16> to vector<8x128xbf16>
    %c8 = arith.constant 8 : index
    %c0_52 = arith.constant 0 : index
    %c0_53 = arith.constant 0 : index
    %115 = vector.load %arg5[%c8, %c0_52, %c0_53] : memref<9x128x128xbf16, #tpu.memory_space<vmem>>, vector<1x128x128xbf16>
    %116 = vector.shape_cast %115 : vector<1x128x128xbf16> to vector<128x128xbf16>
    %cst_54 = arith.constant dense<0.000000e+00> : vector<8x128xf32>
    %117 = tpu.matmul %114, %116, %cst_54 {dimension_numbers = #tpu.dot_dimension_numbers<[1], [0], [0], [1], [0, 0, 1, 1], [], []>} : vector<8x128xbf16>, vector<128x128xbf16>, vector<8x128xf32> -> vector<8x128xf32>
    %118 = arith.addf %113, %117 : vector<8x128xf32>
    %cst_55 = arith.constant dense<0.000000e+00> : vector<128xf32>
    %119 = vector.multi_reduction <add>, %118, %cst_55 [0] : vector<8x128xf32> to vector<128xf32>
    %120 = vector.shape_cast %119 : vector<128xf32> to vector<1x128xf32>
    %121 = vector.shape_cast %120 : vector<1x128xf32> to vector<1x1x1x128xf32>
    %c0_56 = arith.constant 0 : index
    %c0_57 = arith.constant 0 : index
    %c0_58 = arith.constant 0 : index
    %c0_59 = arith.constant 0 : index
    %122 = vector.load %arg9[%c0_56, %c0_57, %c0_58, %c0_59] : memref<1x1x2x128xf32, #tpu.memory_space<vmem>>, vector<1x1x1x128xf32>
    tpu.vector_store %arg9[%c0_56, %c0_57, %c0_58, %c0_59], %121 {strides = array<i32>} : memref<1x1x2x128xf32, #tpu.memory_space<vmem>>, vector<1x1x1x128xf32>,
    %123 = arith.mulf %118, %118 : vector<8x128xf32>
    %cst_60 = arith.constant dense<0.000000e+00> : vector<128xf32>
    %124 = vector.multi_reduction <add>, %123, %cst_60 [0] : vector<8x128xf32> to vector<128xf32>
    %125 = vector.shape_cast %124 : vector<128xf32> to vector<1x128xf32>
    %126 = vector.shape_cast %125 : vector<1x128xf32> to vector<1x1x1x128xf32>
    %c0_61 = arith.constant 0 : index
    %c0_62 = arith.constant 0 : index
    %c1_63 = arith.constant 1 : index
    %c0_64 = arith.constant 0 : index
    %127 = vector.load %arg9[%c0_61, %c0_62, %c1_63, %c0_64] : memref<1x1x2x128xf32, #tpu.memory_space<vmem>>, vector<1x1x1x128xf32>
    tpu.vector_store %arg9[%c0_61, %c0_62, %c1_63, %c0_64], %126 {strides = array<i32>} : memref<1x1x2x128xf32, #tpu.memory_space<vmem>>, vector<1x1x1x128xf32>,
    %128 = arith.truncf %118 : vector<8x128xf32> to vector<8x128xbf16>
    %129 = vector.shape_cast %128 : vector<8x128xbf16> to vector<1x1x8x128xbf16>
    %c0_65 = arith.constant 0 : index
    %c0_66 = arith.constant 0 : index
    %c0_67 = arith.constant 0 : index
    %c0_68 = arith.constant 0 : index
    %130 = vector.load %arg8[%c0_65, %c0_66, %c0_67, %c0_68] : memref<1x1x8x128xbf16, #tpu.memory_space<vmem>>, vector<1x1x8x128xbf16>
    tpu.vector_store %arg8[%c0_65, %c0_66, %c0_67, %c0_68], %129 {strides = array<i32>} : memref<1x1x8x128xbf16, #tpu.memory_space<vmem>>, vector<1x1x8x128xbf16>,
    return
  }
  func.func @transform_0(%arg0: i32, %arg1: i32) -> (i32, i32, i32, i32) {
    %c0_i32 = arith.constant 0 : i32
    %c0_i32_0 = arith.constant 0 : i32
    %c0_i32_1 = arith.constant 0 : i32
    return %arg0, %arg1, %c0_i32, %c0_i32_0 : i32, i32, i32, i32
  }
  func.func @transform_1(%arg0: i32, %arg1: i32) -> (i32, i32, i32, i32) {
    %c1_i32 = arith.constant 1 : i32
    %0 = arith.addi %arg1, %c1_i32 : i32
    %c0_i32 = arith.constant 0 : i32
    %c0_i32_0 = arith.constant 0 : i32
    %c0_i32_1 = arith.constant 0 : i32
    return %arg0, %0, %c0_i32, %c0_i32_0 : i32, i32, i32, i32
  }
  func.func @transform_2(%arg0: i32, %arg1: i32) -> (i32, i32, i32, i32) {
    %c2_i32 = arith.constant 2 : i32
    %0 = arith.addi %arg1, %c2_i32 : i32
    %c0_i32 = arith.constant 0 : i32
    %c0_i32_0 = arith.constant 0 : i32
    %c0_i32_1 = arith.constant 0 : i32
    return %arg0, %0, %c0_i32, %c0_i32_0 : i32, i32, i32, i32
  }
  func.func @transform_3(%arg0: i32, %arg1: i32) -> (i32, i32, i32) {
    %c0_i32 = arith.constant 0 : i32
    %c0_i32_0 = arith.constant 0 : i32
    %c0_i32_1 = arith.constant 0 : i32
    %c0_i32_2 = arith.constant 0 : i32
    return %c0_i32, %c0_i32_0, %c0_i32_1 : i32, i32, i32
  }
  func.func @transform_4(%arg0: i32, %arg1: i32) -> (i32, i32) {
    %c0_i32 = arith.constant 0 : i32
    %c0_i32_0 = arith.constant 0 : i32
    %c0_i32_1 = arith.constant 0 : i32
    return %c0_i32, %c0_i32_0 : i32, i32
  }
  func.func @transform_5(%arg0: i32, %arg1: i32) -> (i32, i32) {
    %c0_i32 = arith.constant 0 : i32
    %c0_i32_0 = arith.constant 0 : i32
    %c0_i32_1 = arith.constant 0 : i32
    return %c0_i32, %c0_i32_0 : i32, i32
  }
  func.func @transform_6(%arg0: i32, %arg1: i32) -> (i32, i32, i32, i32) {
    %c0_i32 = arith.constant 0 : i32
    %c0_i32_0 = arith.constant 0 : i32
    %c0_i32_1 = arith.constant 0 : i32
    return %arg0, %arg1, %c0_i32, %c0_i32_0 : i32, i32, i32, i32
  }
  func.func @transform_7(%arg0: i32, %arg1: i32) -> (i32, i32, i32, i32) {
    %c0_i32 = arith.constant 0 : i32
    %c0_i32_0 = arith.constant 0 : i32
    %c0_i32_1 = arith.constant 0 : i32
    return %arg0, %arg1, %c0_i32, %c0_i32_0 : i32, i32, i32, i32
  }
}

module attributes {stable_mosaic.version = 11 : i64} {
  func.func @_bn_relu_kernel(%arg0: i32, %arg1: i32, %arg2: memref<1x1x8x128xbf16, #tpu.memory_space<vmem>>, %arg3: memref<1x128xf32, #tpu.memory_space<vmem>>, %arg4: memref<1x128xf32, #tpu.memory_space<vmem>>, %arg5: memref<1x1x8x128xf32, #tpu.memory_space<vmem>>) attributes {dimension_semantics = [#tpu.dimension_semantics<parallel>, #tpu.dimension_semantics<parallel>], iteration_bounds = array<i64: 2, 8>, scalar_prefetch = 0 : i64, scratch_operands = 0 : i64, tpu.core_type = #tpu.core_type<tc>, window_params = [{transform_indices = @transform_0, window_bounds = array<i64: 1, 1, 8, 128>}, {pipeline_mode = #tpu.pipeline_mode<synchronous>, transform_indices = @transform_1, window_bounds = array<i64: 1, 128>}, {pipeline_mode = #tpu.pipeline_mode<synchronous>, transform_indices = @transform_2, window_bounds = array<i64: 1, 128>}, {transform_indices = @transform_3, window_bounds = array<i64: 1, 1, 8, 128>}]} {
    %c0 = arith.constant 0 : index
    %c0_0 = arith.constant 0 : index
    %c0_1 = arith.constant 0 : index
    %c0_2 = arith.constant 0 : index
    %0 = vector.load %arg2[%c0, %c0_0, %c0_1, %c0_2] : memref<1x1x8x128xbf16, #tpu.memory_space<vmem>>, vector<1x1x8x128xbf16>
    %1 = arith.extf %0 : vector<1x1x8x128xbf16> to vector<1x1x8x128xf32>
    %c0_3 = arith.constant 0 : index
    %c0_4 = arith.constant 0 : index
    %2 = vector.load %arg3[%c0_3, %c0_4] : memref<1x128xf32, #tpu.memory_space<vmem>>, vector<1x128xf32>
    %3 = vector.shape_cast %2 : vector<1x128xf32> to vector<1x1x1x128xf32>
    %4 = vector.broadcast %3 : vector<1x1x1x128xf32> to vector<1x1x8x128xf32>
    %5 = arith.mulf %1, %4 : vector<1x1x8x128xf32>
    %c0_5 = arith.constant 0 : index
    %c0_6 = arith.constant 0 : index
    %6 = vector.load %arg4[%c0_5, %c0_6] : memref<1x128xf32, #tpu.memory_space<vmem>>, vector<1x128xf32>
    %7 = vector.shape_cast %6 : vector<1x128xf32> to vector<1x1x1x128xf32>
    %8 = vector.broadcast %7 : vector<1x1x1x128xf32> to vector<1x1x8x128xf32>
    %9 = arith.addf %5, %8 : vector<1x1x8x128xf32>
    %cst = arith.constant 0.000000e+00 : f32
    %10 = vector.broadcast %cst : f32 to vector<1x1x8x128xf32>
    %11 = arith.maximumf %9, %10 : vector<1x1x8x128xf32>
    %c0_7 = arith.constant 0 : index
    %c0_8 = arith.constant 0 : index
    %c0_9 = arith.constant 0 : index
    %c0_10 = arith.constant 0 : index
    %12 = vector.load %arg5[%c0_7, %c0_8, %c0_9, %c0_10] : memref<1x1x8x128xf32, #tpu.memory_space<vmem>>, vector<1x1x8x128xf32>
    tpu.vector_store %arg5[%c0_7, %c0_8, %c0_9, %c0_10], %11 {strides = array<i32>} : memref<1x1x8x128xf32, #tpu.memory_space<vmem>>, vector<1x1x8x128xf32>,
    return
  }
  func.func @transform_0(%arg0: i32, %arg1: i32) -> (i32, i32, i32, i32) {
    %c0_i32 = arith.constant 0 : i32
    %c0_i32_0 = arith.constant 0 : i32
    %c0_i32_1 = arith.constant 0 : i32
    return %arg0, %arg1, %c0_i32, %c0_i32_0 : i32, i32, i32, i32
  }
  func.func @transform_1(%arg0: i32, %arg1: i32) -> (i32, i32) {
    %c0_i32 = arith.constant 0 : i32
    %c0_i32_0 = arith.constant 0 : i32
    %c0_i32_1 = arith.constant 0 : i32
    return %c0_i32, %c0_i32_0 : i32, i32
  }
  func.func @transform_2(%arg0: i32, %arg1: i32) -> (i32, i32) {
    %c0_i32 = arith.constant 0 : i32
    %c0_i32_0 = arith.constant 0 : i32
    %c0_i32_1 = arith.constant 0 : i32
    return %c0_i32, %c0_i32_0 : i32, i32
  }
  func.func @transform_3(%arg0: i32, %arg1: i32) -> (i32, i32, i32, i32) {
    %c0_i32 = arith.constant 0 : i32
    %c0_i32_0 = arith.constant 0 : i32
    %c0_i32_1 = arith.constant 0 : i32
    return %arg0, %arg1, %c0_i32, %c0_i32_0 : i32, i32, i32, i32
  }
}

</mosaic_0001>

<bundles_post_ra>
// kernel: down_forward.4
= control target key start
LH: loop header
LB: loop body
LE: loop exit
PB: predicated region body
PF: predicated region fallthrough
CT: control target
= control target key end

     0   :  { %s455_s6 = smov 0   ;;  %s457_s7 = smov 0   ;;  %s515_s0 = inlined_call_operand.vmem [shape: f32[2,16,16,4], index: 0, kind: input, shape index: {}]   ;;  %s516_s1 = inlined_call_operand.vmem [shape: f32[2,10,10,4], index: 1, kind: output, shape index: {}]  }
   0x1   :  { %s459_s8 = smov 0   ;;  %s461_s9 = smov 0  }
   0x2   :  { %s463_s10 = smov 0  }
   0x3 LB: > { %s20_s11 = sadd.s32 1, %s433_s8  ;;  %s23_s12 = sadd.s32 1, %s437_s9  ;;  %s441_s10 = sphi %s463_s10, %s11_s10   ;;  %s437_s9 = sphi %s461_s9, %s520_s9   ;;  %s433_s8 = sphi %s459_s8, %s519_s8   ;;  %s429_s7 = sphi %s457_s7, %s518_s7   ;;  %s425_s6 = sphi %s455_s6, %s517_s6  }
   0x4   : > { %p21_p0 = scmp.ge.s32.totalorder %s20_s11, 10  ;;  %p336_p1 = scmp.ge.s32.totalorder %s441_s10, 1 }
   0x5   : > { %p129_p2 = scmp.lt.s32.totalorder %s441_s10, 21 }
   0x6   : > { %s522_s11 = smov (%p21_p0, %s20_s11), 0  ;;  %s524_s12 = smov (!%p21_p0, %s23_s12), %s437_s9 }
   0x7   : > { %p130_p3 = pnand %p336_p1, %p129_p2  ;;  %p25_p4 = scmp.ge.s32.totalorder %s524_s12, 2 }
   0x8   : > { %s337_s13 = sadd.s32 (!%p130_p3), 4294967295, %s425_s6  ;;  %p169_p5 = scmp.lt.s32.totalorder (!%p130_p3), %s429_s7, 1 }
   0x9   : > { %s526_s12 = smov (%p25_p4, %s524_s12), 0  ;;  %133 = sbr.rel (%p130_p3) target bundleno = 39 (0x27), region = 24 }
   0xa   : > { %p164_p6 = scmp.gt.s32.totalorder (!%p130_p3), %s337_s13, 0  ;;  %p338_p7 = scmp.lt.s32.totalorder (!%p130_p3), %s337_s13, 7 }
   0xb   : > { %p186_p8 = scmp.lt.s32.totalorder (!%p130_p3), %s425_s6, 9  ;;  %p193_p10 = scmp.eq.s32.totalorder (!%p130_p3), %s425_s6, 0 }
   0xc   : > { %p194_p11 = scmp.eq.s32.totalorder (!%p130_p3), %s425_s6, 9 }
   0xe   : > { %p195_p12 = por (!%p130_p3), %p194_p11, %p193_p10 }
  0x10   : > { %s528_s7 = smov (!%p169_p5, %s429_s7), 1  ;;  %s530_s13 = smov (!%p164_p6, %s337_s13), 0 }
  0x11   : > { %s345_s14 = sshll.u32 %s528_s7, 5  ;;  %s532_s13 = smov (!%p338_p7, %s530_s13), 7  ;;  %vm199_vm0 = vcmask (%p195_p12), 31744   ;;  %vm201_vm1 = vcmask (%p195_p12), 25600   ;;  %v443_v0 = vmov (%p195_p12), 0.0  }
  0x12   : > { %s187_s15 = scalar_select %p186_p8, %s425_s6, 9 }
  0x13   : > { %s343_s16 = sshll.u32 %s532_s13, 1  ;;  %s360_s17 = smul.u32 20, %s528_s7 }
  0x14   : > { %p171_p9 = scmp.lt.s32.totalorder %s343_s16, 15  ;;  %s347_s18 = sshll.u32 %s187_s15, 1 }
  0x15   : > { %s190_s19 = sadd.s32 %s360_s17, %s347_s18  ;;  %198 = sbr.rel (!%p195_p12) target bundleno = 28 (0x1c), region = 28 }
  0x16   : > { %s534_s16 = smov (!%p171_p9, %s343_s16), 15  ;;  %s348_s20 = sshll.u32 %s190_s19, 3 }
  0x17   : > { %s344_s21 = sshll.u32 %s534_s16, 1  ;;  %s192_s24 = scalar_lea.vmem %s516_s1, %s348_s20 }
  0x18   : > { %s175_s25 = sadd.s32 %s345_s14, %s344_s21  ;;  %200 = vst.msk [vmem:[%s192_s24] sm:$0xff] (%p195_p12), %vm199_vm0, %v443_v0 }
  0x19   : > { %s346_s26 = sshll.u32 %s175_s25, 3  ;;  %202 = vst.msk [vmem:[%s192_s24 + $0x8] sm:$0x3] (%p195_p12), %vm201_vm1, %v443_v0 }
  0x1a   : > { %s177_s29 = scalar_lea.vmem %s515_s0, %s346_s26 }
  0x1c PF: > { %p203_p13 = scmp.gt.s32.totalorder %s425_s6, 0  ;;  %p204_p0 = scmp.le.s32.totalorder %s425_s6, 8 }
  0x1e   : > { %p205_p1 = pnand %p204_p0, %p203_p13 }
  0x1f   : > { %vm219_vm2 = vcmask (!%p205_p1), 24576   ;;  %v209_v1 = vld [vmem:[%s177_s29] ss:$2 sm:$0xff] (!%p205_p1)  ;;  %v349_v2 = vld [vmem:[%s177_s29 + $0x1] ss:$2 sm:$0xff] (!%p205_p1)  ;;  %v444_v3 = vmov (!%p205_p1), 0.0  }
  0x20   : > { %208 = sbr.rel (%p205_p1) target bundleno = 39 (0x27), region = 32  ;;  %220 = vst.msk [vmem:[%s192_s24] sm:$0x1] (!%p205_p1), %vm219_vm2, %v444_v3  ;;  %221 = vst.msk [vmem:[%s192_s24 + $0x9] sm:$0x1] (!%p205_p1), %vm219_vm2, %v444_v3  ;;  %v216_v6 = vmax.f32 (!%p205_p1), %v209_v1, %v349_v2  ;;  %vm222_vm3 = vcmask (!%p205_p1), 31744  }
  0x21   : > { %v350_v4 = vld [vmem:[%s177_s29 + $0x10] ss:$2 sm:$0xff] (!%p205_p1)  ;;  %v351_v5 = vld [vmem:[%s177_s29 + $0x11] ss:$2 sm:$0xff] (!%p205_p1) }
  0x22   : > { %v217_v7 = vmax.f32 (!%p205_p1), %v350_v4, %v351_v5 }
  0x24   : > { %v218_v8 = vmax.f32 (!%p205_p1), %v216_v6, %v217_v7 }
  0x26   : > { %223 = vst.msk [vmem:[%s192_s24 + $0x1] sm:$0xff] (!%p205_p1), %vm222_vm3, %v218_v8 }
  0x27 PF: > { %s11_s10 = sadd.s32 1, %s441_s10   ;;  %s517_s6 = smov %s433_s8 }
  0x28   : > { %p8_p2 = scmp.ge.s32.totalorder %s11_s10, 22   ;;  %s518_s7 = smov %s437_s9 }
  0x29   : > { %s519_s8 = smov %s522_s11  ;;  %s520_s9 = smov %s526_s12 }
  0x2a   :  { %10 = sbr.rel (!%p8_p2) target bundleno = 3 (0x3), region = 65 }

// kernel: down_forward.7
= control target key start
LH: loop header
LB: loop body
LE: loop exit
PB: predicated region body
PF: predicated region fallthrough
CT: control target
= control target key end

     0   :  { %s421_s12 = smov 0   ;;  %s423_s13 = smov 0   ;;  %s472_s0 = inlined_call_operand.vmem [shape: bf16[2,8,8,128], index: 0, kind: input, shape index: {}]   ;;  %s473_s1 = inlined_call_operand.vmem [shape: f32[1,128], index: 1, kind: input, shape index: {}]   ;;  %s474_s2 = inlined_call_operand.vmem [shape: f32[1,128], index: 2, kind: input, shape index: {}]   ;;  %s475_s3 = inlined_call_operand.vmem [shape: f32[2,8,8,128], index: 3, kind: output, shape index: {}]  }
   0x1   :  { %s425_s14 = smov 0   ;;  %s427_s15 = smov 0  }
   0x2   :  { %s429_s16 = smov 0  }
   0x3 LB: > { %s22_s17 = sadd.s32 1, %s391_s14  ;;  %s25_s18 = sadd.s32 1, %s395_s15  ;;  %s399_s16 = sphi %s429_s16, %s13_s16   ;;  %s395_s15 = sphi %s427_s15, %s479_s15   ;;  %s391_s14 = sphi %s425_s14, %s478_s14   ;;  %s387_s13 = sphi %s423_s13, %s477_s13   ;;  %s383_s12 = sphi %s421_s12, %s476_s12  }
   0x4   : > { %p23_p0 = scmp.ge.s32.totalorder %s22_s17, 8  ;;  %p312_p1 = scmp.ge.s32.totalorder %s399_s16, 1 }
   0x5   : > { %p156_p2 = scmp.lt.s32.totalorder %s399_s16, 17 }
   0x6   : > { %s481_s17 = smov (%p23_p0, %s22_s17), 0  ;;  %s483_s18 = smov (!%p23_p0, %s25_s18), %s395_s15 }
   0x7   : > { %p157_p3 = pnand %p312_p1, %p156_p2  ;;  %p27_p4 = scmp.ge.s32.totalorder %s483_s18, 2 }
   0x8   : > { %p186_p5 = scmp.lt.s32.totalorder (!%p157_p3), %s387_s13, 1  ;;  %p188_p6 = scmp.lt.s32.totalorder (!%p157_p3), %s383_s12, 7  ;;  %v317_v1 = vld [vmem:[%s473_s1] ss:$0 sm:$0xff] (!%p157_p3) }
   0x9   : > { %s485_s18 = smov (%p27_p4, %s483_s18), 0  ;;  %160 = sbr.rel (%p157_p3) target bundleno = 31 (0x1f), region = 32 }
   0xa   : > { %v318_v3 = vld [vmem:[%s474_s2] ss:$0 sm:$0xff] (!%p157_p3) }
  0x10   : > { %s487_s13 = smov (!%p186_p5, %s387_s13), 1  ;;  %s489_s12 = smov (!%p188_p6, %s383_s12), 7 }
  0x11   : > { %s313_s19 = sshll.u32 %s487_s13, 3 }
  0x12   : > { %s191_s20 = sadd.s32 %s313_s19, %s489_s12 }
  0x13   : > { %s314_s21 = sshll.u32 %s191_s20, 2  ;;  %s316_s29 = sshll.u32 %s191_s20, 3 }
  0x14   : > { %s193_s24 = scalar_lea.vmem %s472_s0, %s314_s21  ;;  %s201_s5 = scalar_lea.vmem %s475_s3, %s316_s29 }
  0x15   : > { %v202_v0 = vld [vmem:[%s193_s24] sm:$0xf] }
  0x16   : > { %v203_v2 = vunpack.c.l.bf16 %v202_v0 }
  0x18   : > { %v211_v4 = vmul.f32 %v317_v1, %v203_v2 }
  0x1a   : > { %v219_v5 = vadd.f32 %v318_v3, %v211_v4 }
  0x1c   : > { %v220_v6 = vmax.f32 %v219_v5, 0.0 }
  0x1e   : > { %221 = vst [vmem:[%s201_s5] sm:$0xff] %v220_v6 }
  0x1f PF: > { %s13_s16 = sadd.s32 1, %s399_s16   ;;  %s476_s12 = smov %s391_s14 }
  0x20   : > { %p10_p7 = scmp.ge.s32.totalorder %s13_s16, 18   ;;  %s477_s13 = smov %s395_s15 }
  0x21   : > { %s478_s14 = smov %s481_s17  ;;  %s479_s15 = smov %s485_s18 }
  0x22   :  { %12 = sbr.rel (!%p10_p7) target bundleno = 3 (0x3), region = 62 }

// kernel: down_forward.5
= control target key start
LH: loop header
LB: loop body
LE: loop exit
PB: predicated region body
PF: predicated region fallthrough
CT: control target
= control target key end

     0   :  { %s1439_s18 = smov 0   ;;  %s1441_s19 = smov 0   ;;  %s1623_s0 = inlined_call_operand.vmem [shape: f32[2,10,10,4], index: 0, kind: input, shape index: {}, may-alias: {0,1,2}]   ;;  %s1624_s1 = inlined_call_operand.vmem [shape: f32[2,10,10,4], index: 1, kind: input, shape index: {}, may-alias: {0,1,2}]   ;;  %s1625_s2 = inlined_call_operand.vmem [shape: f32[2,10,10,4], index: 2, kind: input, shape index: {}, may-alias: {0,1,2}]   ;;  %s1626_s3 = inlined_call_operand.vmem [shape: bf16[9,4,128], index: 3, kind: input, shape index: {}]   ;;  %s1627_s4 = inlined_call_operand.vmem [shape: bf16[2,10,10,128], index: 4, kind: output, shape index: {0}]   ;;  %s1628_s5 = inlined_call_operand.vmem [shape: f32[2,10,2,128], index: 5, kind: output, shape index: {1}]  }
   0x1   :  { %s1443_s20 = smov 0   ;;  %s1445_s21 = smov 0  }
   0x2   :  { %s1447_s22 = smov 0  }
   0x3 LB: > { %s25_s23 = sadd.s32 1, %s1395_s20  ;;  %s28_s24 = sadd.s32 1, %s1399_s21  ;;  %s1403_s22 = sphi %s1447_s22, %s16_s22   ;;  %s1399_s21 = sphi %s1445_s21, %s1636_s21   ;;  %s1395_s20 = sphi %s1443_s20, %s1635_s20   ;;  %s1391_s19 = sphi %s1441_s19, %s1634_s19   ;;  %s1387_s18 = sphi %s1439_s18, %s1633_s18  }
   0x4   : > { %p26_p0 = scmp.ge.s32.totalorder %s25_s23, 10  ;;  %p1164_p1 = scmp.ge.s32.totalorder %s1403_s22, 1 }
   0x5   : > { %p284_p2 = scmp.lt.s32.totalorder %s1403_s22, 21 }
   0x6   : > { %s1638_s23 = smov (%p26_p0, %s25_s23), 0  ;;  %s1640_s24 = smov (!%p26_p0, %s28_s24), %s1399_s21 }
   0x7   : > { %p285_p3 = pnand %p1164_p1, %p284_p2  ;;  %p30_p4 = scmp.ge.s32.totalorder %s1640_s24, 2 }
   0x8   : > { %s1165_s25 = sadd.s32 (!%p285_p3), 4294967295, %s1387_s18  ;;  %p361_p5 = scmp.lt.s32.totalorder (!%p285_p3), %s1391_s19, 1 }
   0x9   : > { %s1642_s24 = smov (%p30_p4, %s1640_s24), 0  ;;  %288 = sbr.rel (%p285_p3) target bundleno = 326 (0x146), region = 36 }
   0xa   : > { %1629 = sst [smem:[#allocation2_spill]] %s1642_s24  ;;  %p357_p6 = scmp.gt.s32.totalorder (!%p285_p3), %s1165_s25, 0 }
   0xb   : > { %p1166_p7 = scmp.lt.s32.totalorder (!%p285_p3), %s1165_s25, 9  ;;  %p377_p8 = scmp.lt.s32.totalorder (!%p285_p3), %s1387_s18, 9 }
   0xc   : > { %s384_s28 = sadd.s32 (!%p285_p3), 1, %s1387_s18  ;;  %p421_p12 = scmp.eq.s32.totalorder (!%p285_p3), %s1387_s18, 0 }
   0xd   : > { %p385_p10 = scmp.gt.s32.totalorder (!%p285_p3), %s384_s28, 0  ;;  %p1175_p11 = scmp.lt.s32.totalorder (!%p285_p3), %s384_s28, 9 }
   0xe   : > { %p422_p13 = scmp.eq.s32.totalorder (!%p285_p3), %s1387_s18, 9 }
  0x10   : > { %s1644_s19 = smov (!%p361_p5, %s1391_s19), 1  ;;  %s1646_s25 = smov (!%p357_p6, %s1165_s25), 0 }
  0x11   : > { %s1472_s26 = smul.u32 20, %s1644_s19  ;;  %s1648_s25 = smov (!%p1166_p7, %s1646_s25), 9 }
  0x12   : > { %s378_s27 = scalar_select %p377_p8, %s1387_s18, 9 }
  0x13   : > { %p363_p9 = scmp.lt.s32.totalorder %s1648_s25, 9  ;;  %s1652_s28 = smov (!%p385_p10, %s384_s28), 0 }
  0x14   : > { %s1173_s29 = sshll.u32 %s378_s27, 1  ;;  %s1654_s28 = smov (!%p1175_p11, %s1652_s28), 9 }
  0x15   : > { %s1650_s25 = smov (!%p363_p9, %s1648_s25), 9  ;;  %s381_s30 = sadd.s32 %s1472_s26, %s1173_s29 }
  0x16   : > { %s1171_s6 = sshll.u32 %s1650_s25, 1  ;;  %s1174_s7 = sshll.u32 %s381_s30, 3 }
  0x17   : > { %s367_s8 = sadd.s32 %s1472_s26, %s1171_s6  ;;  %s1482_s11 = scalar_lea.vmem %s1624_s1, %s1174_s7 }
  0x18   : > { %s1172_s12 = sshll.u32 %s367_s8, 3  ;;  %s1183_s13 = sshll.u32 %s381_s30, 2 }
  0x19   : > { %s1487_s16 = scalar_lea.vmem %s1623_s0, %s1172_s12  ;;  %s1492_s29 = scalar_lea.vmem %s1627_s4, %s1183_s13 }
  0x1a   : > { %s1320_s25 = smul.u32 10, %s1644_s19  ;;  %p391_p0 = scmp.lt.s32.totalorder %s1654_s28, 9 }
  0x1b   : > { %p423_p1 = por %p422_p13, %p421_p12 }
  0x1c   : > { %s417_s6 = sadd.s32 %s1320_s25, %s378_s27  ;;  %s1656_s28 = smov (!%p391_p0, %s1654_s28), 9  ;;  %v1405_v0 = vmov (%p423_p1), 0   ;;  %v1406_v1 = vmov (%p423_p1), 0.0  }
  0x1d   : > { %s1184_s7 = sshll.u32 %s417_s6, 1  ;;  %s1180_s10 = sshll.u32 %s1656_s28, 1  ;;  %427 = vst [vmem:[%s1492_s29] sm:$0xf] (%p423_p1), %v1405_v0  ;;  %428 = vst [vmem:[%s1492_s29 + $0x4] sm:$0x1] (%p423_p1), %v1405_v0 }
  0x1e   : > { %s1499_s9 = scalar_lea.vmem %s1628_s5, %s1184_s7  ;;  %s395_s12 = sadd.s32 %s1472_s26, %s1180_s10 }
  0x1f   : > { %s1181_s24 = sshll.u32 %s395_s12, 3  ;;  %426 = sbr.rel (!%p423_p1) target bundleno = 38 (0x26), region = 40  ;;  %429 = vst [vmem:[%s1499_s9] sm:$0x3] (%p423_p1), %v1406_v1 }
  0x20   : > { %s1505_s19 = scalar_lea.vmem %s1625_s2, %s1181_s24 }
  0x26 PF: > { %432 = sbr.rel (%p423_p1) target bundleno = 326 (0x146), region = 44  ;;  %vm456_vm0 = vcmask (!%p423_p1), 1041408   ;;  %v1192_v2 = vld [vmem:[%s1626_s3 + $0x8] sm:$0x3] (!%p423_p1)  ;;  %v1185_v3 = vld [vmem:[%s1626_s3 + $0x2] sm:$0x3] (!%p423_p1) }
  0x27   : > { %v1407_v4 = vmov (!%p423_p1), 0.0   ;;  %v657_v5 = vsel (!%p423_p1), %vm456_vm0, %v1192_v2, 0  ;;  %v458_v6 = vsel (!%p423_p1), %vm456_vm0, %v1185_v3, 0  ;;  %v433_v7 = vld [vmem:[%s1487_s16] sm:$0xff] (!%p423_p1)  ;;  %v434_v8 = vld [vmem:[%s1487_s16 + $0x8] sm:$0x3] (!%p423_p1) }
  0x28   : > { %1260 = vmatprep.subr.bf16.mxu0 (!%p423_p1), %v1407_v4  ;;  %1236 = vmatprep.subr.bf16.mxu1 (!%p423_p1), %v1407_v4  ;;  %v435_v9 = vpack.c.bf16 (!%p423_p1), %v434_v8, %v433_v7  ;;  %v436_v10 = vld [vmem:[%s1482_s11] sm:$0xff] (!%p423_p1)  ;;  %v437_v11 = vld [vmem:[%s1482_s11 + $0x8] sm:$0x3] (!%p423_p1)  ;;  %vm1408_vm1 = vmmov (!%p423_p1), 0   ;;  %v1194_v19 = vld [vmem:[%s1626_s3 + $0xa] sm:$0x3] (!%p423_p1) }
  0x29   : > { %1261 = vmatpush3.bf16.msra.mxu0 (!%p423_p1), %v657_v5  ;;  %1237 = vmatpush3.bf16.msra.mxu1 (!%p423_p1), %v458_v6  ;;  %v438_v12 = vpack.c.bf16 (!%p423_p1), %v437_v11, %v436_v10  ;;  %v442_v17 = vld [vmem:[%s1626_s3] sm:$0x3] (!%p423_p1)  ;;  %vm452_vm2 = vcmask (!%p423_p1), 31744   ;;  %v708_v24 = vsel (!%p423_p1), %vm456_vm0, %v1194_v19, 0  ;;  %v1188_v25 = vld [vmem:[%s1626_s3 + $0x4] sm:$0x3] (!%p423_p1) }
  0x2a   : > { %1238 = vmatprep.mubr.msk.bf16.mxu1 (!%p423_p1), %vm1408_vm1, %v1407_v4  ;;  %1262 = vmatprep.mubr.msk.bf16.mxu0 (!%p423_p1), %vm1408_vm1, %v1407_v4  ;;  %v446_v13 = vshrl.u32 (!%p423_p1), %v435_v9, 16  ;;  %v448_v14 = vshll.u32 (!%p423_p1), %v435_v9, 16  ;;  %v503_v22 = vsel (!%p423_p1), %vm456_vm0, %v442_v17, 0  ;;  %v1196_v26 = vld [vmem:[%s1626_s3 + $0xc] sm:$0x3] (!%p423_p1)  ;;  %v553_v28 = vsel (!%p423_p1), %vm456_vm0, %v1188_v25, 0 }
  0x2b   : > { %1266 = vmatprep.subr.bf16.mxu0 (!%p423_p1), %v1407_v4  ;;  %1242 = vmatprep.subr.bf16.mxu1 (!%p423_p1), %v1407_v4  ;;  %v647_v15 = vshrl.u32 (!%p423_p1), %v438_v12, 16  ;;  %v649_v16 = vshll.u32 (!%p423_p1), %v438_v12, 16  ;;  %v703_v27 = vrot.slane (!%p423_p1), %v438_v12, 1  ;;  %v757_v29 = vsel (!%p423_p1), %vm456_vm0, %v1196_v26, 0  ;;  %v439_v30 = vld [vmem:[%s1505_s19] sm:$0xff] (!%p423_p1) }
  0x2c   : > { %v450_v18 = vrot.slane (!%p423_p1), %v448_v14, 1  ;;  %v440_v31 = vld [vmem:[%s1505_s19 + $0x8] sm:$0x3] (!%p423_p1)  ;;  %v1190_v32 = vld [vmem:[%s1626_s3 + $0x6] sm:$0x3] (!%p423_p1)  ;;  %v548_v33 = vrot.slane (!%p423_p1), %v435_v9, 1 }
  0x2d   : > { %v651_v20 = vrot.slane %v649_v16, 1  ;;  %v1198_v34 = vld [vmem:[%s1626_s3 + $0xe] sm:$0x3]  ;;  %v441_v35 = vpack.c.bf16 %v440_v31, %v439_v30  ;;  %v602_v36 = vsel %vm456_vm0, %v1190_v32, 0  ;;  %v1200_v41 = vld [vmem:[%s1626_s3 + $0x10] sm:$0x3] }
  0x2e   : > { %v451_v21 = vor.u32 %v450_v18, %v446_v13  ;;  %v812_v37 = vsel %vm456_vm0, %v1198_v34, 0  ;;  %v863_v43 = vsel %vm456_vm0, %v1200_v41, 0  ;;  %vm921_vm3 = vcmask 1040384   ;;  %v924_v46 = vld [vmem:[%s1492_s29] sm:$0x1] }
  0x2f   : > { %v652_v23 = vor.u32 %v651_v20, %v647_v15  ;;  %v804_v38 = vshll.u32 %v441_v35, 16  ;;  %v802_v39 = vshrl.u32 %v441_v35, 16  ;;  %v858_v44 = vrot.slane %v441_v35, 1  ;;  %v929_v47 = vld [vmem:[%s1492_s29 + $0x4] sm:$0x1] }
  0x30   : > { %1239 = vmatmul.mubr.msk.bf16.vlgmr.msra.gmra.mrb[0].mxu1 %vm452_vm2, %v451_v21  ;;  %vm922_vm4 = vsmask.f32 256  ;;  %vm927_vm5 = vsmask.f32 7938  ;;  %vm946_vm8 = vcmask 1043456  }
  0x31   : > { %1263 = vmatmul.mubr.msk.bf16.vlgmr.msra.gmra.mrb[0].mxu0 %vm452_vm2, %v652_v23  ;;  %1243 = vmatpush3.bf16.msra.mxu1 %v503_v22  ;;  %v806_v40 = vrot.slane %v804_v38, 1  ;;  %vm1588_vm6 = vmand %vm921_vm3, %vm922_vm4 }
  0x32   : > { %1267 = vmatpush3.bf16.msra.mxu0 %v708_v24  ;;  %1244 = vmatprep.mubr.msk.bf16.mxu1 %vm1408_vm1, %v1407_v4  ;;  %v925_v48 = vsel %vm1588_vm6, 0, %v924_v46  ;;  %vm928_vm7 = vmand %vm921_vm3, %vm927_vm5 }
  0x33   : > { %1268 = vmatprep.mubr.msk.bf16.mxu0 %vm1408_vm1, %v1407_v4  ;;  %1272 = vmatprep.subr.bf16.mxu0 %v1407_v4  ;;  %v807_v42 = vor.u32 %v806_v40, %v802_v39  ;;  %926 = vst [vmem:[%s1492_s29] sm:$0x1] %v925_v48  ;;  %v930_v49 = vsel %vm928_vm7, 0, %v929_v47  ;;  %vm947_vm9 = vmand %vm946_vm8, %vm927_vm5 }
  0x34   : > { %1248 = vmatprep.subr.bf16.mxu1 %v1407_v4  ;;  %931 = vst [vmem:[%s1492_s29 + $0x4] sm:$0x1] %v930_v49 }
  0x3a   : > { %v948_v5 = vld [vmem:[%s1492_s29] sm:$0xf] }
  0x3b   : > { %v951_v6 = vld [vmem:[%s1492_s29 + $0x4] sm:$0x1] }
  0x3c   : > { %1245 = vmatmul.mubr.msk.bf16.vlgmr.msra.gmra.mrb[0].mxu1 %vm452_vm2, %v435_v9 }
  0x3d   : > { %1269 = vmatmul.mubr.msk.bf16.vlgmr.msra.gmra.mrb[0].mxu0 %vm452_vm2, %v703_v27  ;;  %1249 = vmatpush3.bf16.msra.mxu1 %v553_v28 }
  0x3e   : > { %1273 = vmatpush3.bf16.msra.mxu0 %v757_v29  ;;  %1250 = vmatprep.mubr.msk.bf16.mxu1 %vm1408_vm1, %v1407_v4 }
  0x3f   : > { %1274 = vmatprep.mubr.msk.bf16.mxu0 %vm1408_vm1, %v1407_v4  ;;  %1278 = vmatprep.subr.bf16.mxu0 %v1407_v4 }
  0x40   : > { %1254 = vmatprep.subr.bf16.mxu1 %v1407_v4 }
  0x48   : > { %1251 = vmatmul.mubr.msk.bf16.vlgmr.msra.gmra.mrb[0].mxu1 %vm452_vm2, %v548_v33 }
  0x49   : > { %1275 = vmatmul.mubr.msk.bf16.vlgmr.msra.gmra.mrb[0].mxu0 %vm452_vm2, %v441_v35  ;;  %1255 = vmatpush3.bf16.msra.mxu1 %v602_v36 }
  0x4a   : > { %1279 = vmatpush3.bf16.msra.mxu0 %v812_v37  ;;  %1256 = vmatprep.mubr.msk.bf16.mxu1 %vm1408_vm1, %v1407_v4 }
  0x4b   : > { %1280 = vmatprep.mubr.msk.bf16.mxu0 %vm1408_vm1, %v1407_v4  ;;  %1284 = vmatprep.subr.bf16.mxu0 %v1407_v4 }
  0x54   : > { %1257 = vmatmul.mubr.msk.bf16.vlgmr.msra.gmra.mrb[0].mxu1 %vm452_vm2, %v438_v12 }
  0x55   : > { %1281 = vmatmul.mubr.msk.bf16.vlgmr.msra.gmra.mrb[0].mxu0 %vm452_vm2, %v807_v42 }
  0x56   : > { %1285 = vmatpush3.bf16.msra.mxu0 %v863_v43  ;;  %1286 = vmatprep.mubr.msk.bf16.mxu0 %vm1408_vm1, %v1407_v4 }
  0x61   : > { %1287 = vmatmul.mubr.msk.bf16.vlgmr.msra.gmra.mrb[0].mxu0 %vm452_vm2, %v858_v44 }
 0x127   : > { %v638_v50 = vpop.f32.mrb[0].mxu1 }
 0x128   : > { %v1258_v51 = vpop.f32.mrb[1].mxu1 }
 0x129   : > { %v641_v52 = vpop.f32.mrb[2].mxu1 }
 0x12a   : > { %v1259_v53 = vpop.f32.mrb[3].mxu1 }
 0x134   : > { %v899_v54 = vpop.f32.mrb[0].mxu0 }
 0x135   : > { %v1290_v55 = vadd.f32 %v899_v54, %v638_v50  ;;  %v1288_v56 = vpop.f32.mrb[1].mxu0 }
 0x136   : > { %v902_v57 = vpop.f32.mrb[2].mxu0 }
 0x137   : > { %v906_v58 = vrot.slane %v1290_v55, 4  ;;  %v913_v59 = vmul.f32 %v1290_v55, %v1290_v55  ;;  %v1217_v60 = vpack.c.bf16 %v1290_v55, %v1290_v55  ;;  %v1289_v61 = vpop.f32.mrb[3].mxu0 }
 0x139   : > { %v907_v62 = vadd.f32 %v1290_v55, %v906_v58  ;;  %v914_v63 = vrot.slane %v913_v59, 4  ;;  %v937_v0 = vshrl.u32 %v1217_v60, 16  ;;  %v940_v4 = vshll.u32 %v1217_v60, 16 }
 0x13b   : > { %v908_v1 = vrot.slane %v907_v62, 2  ;;  %v915_v2 = vadd.f32 %v914_v63, %v913_v59  ;;  %v939_v3 = vrot.slane %v937_v0, 7 }
 0x13d   : > { %v909_v7 = vadd.f32 %v908_v1, %v907_v62  ;;  %v916_v8 = vrot.slane %v915_v2, 2  ;;  %v942_v9 = vor.u32 %v940_v4, %v939_v3  ;;  %v943_v10 = vrot.slane %v939_v3, 4 }
 0x13f   : > { %v910_v11 = vrot.slane %v909_v7, 1  ;;  %v917_v12 = vadd.f32 %v916_v8, %v915_v2  ;;  %v949_v13 = vsel %vm947_vm9, %v942_v9, %v948_v5  ;;  %v952_v14 = vsel %vm1588_vm6, %v943_v10, %v951_v6 }
 0x140   : > { %950 = vst [vmem:[%s1492_s29] sm:$0xf] %v949_v13  ;;  %953 = vst [vmem:[%s1492_s29 + $0x4] sm:$0x1] %v952_v14 }
 0x141   : > { %v911_v15 = vadd.f32 %v910_v11, %v909_v7  ;;  %v918_v16 = vrot.slane %v917_v12, 1 }
 0x143   : > { %912 = vst [vmem:[%s1499_s9] sm:$0x1] %v911_v15  ;;  %v919_v17 = vadd.f32 %v918_v16, %v917_v12 }
 0x145   : > { %920 = vst [vmem:[%s1499_s9 + $0x1] sm:$0x1] %v919_v17 }
 0x146 PF: > { %s16_s22 = sadd.s32 1, %s1403_s22   ;;  %s1632_s26 = sld [smem:[#allocation2_spill]] }
 0x147   : > { %p13_p2 = scmp.ge.s32.totalorder %s16_s22, 22   ;;  %s1633_s18 = smov %s1395_s20 }
 0x148   : > { %s1634_s19 = smov %s1399_s21  ;;  %s1635_s20 = smov %s1638_s23 }
 0x149   :  { %15 = sbr.rel (!%p13_p2) target bundleno = 3 (0x3), region = 100 }
 0x14c   : > { %s1636_s21 = smov %s1632_s26 }

// kernel: down_forward.6
= control target key start
LH: loop header
LB: loop body
LE: loop exit
PB: predicated region body
PF: predicated region fallthrough
CT: control target
= control target key end

     0   :  { %s2402_s24 = smov 0   ;;  %s2404_s25 = smov 0   ;;  %s2873_s0 = inlined_call_operand.vmem [shape: bf16[2,10,10,128], index: 0, kind: input, shape index: {}, may-alias: {0,1,2}]   ;;  %s2874_s1 = inlined_call_operand.vmem [shape: bf16[2,10,10,128], index: 1, kind: input, shape index: {}, may-alias: {0,1,2}]   ;;  %s2875_s2 = inlined_call_operand.vmem [shape: bf16[2,10,10,128], index: 2, kind: input, shape index: {}, may-alias: {0,1,2}]   ;;  %s2876_s3 = inlined_call_operand.vmem [shape: bf16[9,128,128], index: 3, kind: input, shape index: {}]   ;;  %s2877_s4 = inlined_call_operand.vmem [shape: f32[1,128], index: 4, kind: input, shape index: {}]   ;;  %s2878_s5 = inlined_call_operand.vmem [shape: f32[1,128], index: 5, kind: input, shape index: {}]   ;;  %s2879_s6 = inlined_call_operand.vmem [shape: bf16[2,8,8,128], index: 6, kind: output, shape index: {0}]   ;;  %s2880_s7 = inlined_call_operand.vmem [shape: f32[2,8,2,128], index: 7, kind: output, shape index: {1}]  }
   0x1   :  { %s2406_s26 = smov 0   ;;  %s2408_s27 = smov 0  }
   0x2   :  { %s2410_s28 = smov 0  }
   0x3 LB: > { %s27_s29 = sadd.s32 1, %s2350_s26  ;;  %s30_s30 = sadd.s32 1, %s2354_s27  ;;  %s2358_s28 = sphi %s2410_s28, %s18_s28   ;;  %s2354_s27 = sphi %s2408_s27, %s2887_s27   ;;  %s2350_s26 = sphi %s2406_s26, %s2886_s26   ;;  %s2346_s25 = sphi %s2404_s25, %s2885_s25   ;;  %s2342_s24 = sphi %s2402_s24, %s2884_s24  }
   0x4   : > { %p28_p0 = scmp.ge.s32.totalorder %s27_s29, 8  ;;  %p1695_p1 = scmp.ge.s32.totalorder %s2358_s28, 1 }
   0x5   : > { %p302_p2 = scmp.lt.s32.totalorder %s2358_s28, 17 }
   0x6   : > { %s2889_s29 = smov (%p28_p0, %s27_s29), 0  ;;  %s2891_s30 = smov (!%p28_p0, %s30_s30), %s2354_s27 }
   0x7   : > { %p303_p3 = pnand %p1695_p1, %p302_p2  ;;  %p32_p4 = scmp.ge.s32.totalorder %s2891_s30, 2 }
   0x8   : > { %v2248_v0 = vld [vmem:[%s2876_s3 + $0x40] sm:$0xff] (!%p303_p3)   ;;  %v2360_v1 = vmov (!%p303_p3), 0.0   ;;  %v2250_v3 = vld [vmem:[%s2876_s3 + $0x48] sm:$0xff] (!%p303_p3)   ;;  %vm2361_vm0 = vmmov (!%p303_p3), 0   ;;  %p369_p5 = scmp.lt.s32.totalorder (!%p303_p3), %s2346_s25, 1  ;;  %p371_p6 = scmp.lt.s32.totalorder (!%p303_p3), %s2342_s24, 9  ;;  %v419_v7 = vlaneseq (!%p303_p3) }
   0x9   : > { %s2893_s30 = smov (%p32_p4, %s2891_s30), 0  ;;  %306 = sbr.rel (%p303_p3) target bundleno = 408 (0x198), region = 44 }
   0xa   : > { %1996 = vmatprep.subr.bf16.mxu1 (!%p303_p3), %v2360_v1  ;;  %2076 = vmatprep.subr.bf16.mxu0 (!%p303_p3), %v2360_v1  ;;  %v2249_v2 = vld [vmem:[%s2876_s3 + $0x100] sm:$0xff] (!%p303_p3)   ;;  %v2251_v4 = vld [vmem:[%s2876_s3 + $0x108] sm:$0xff] (!%p303_p3)   ;;  %v2252_v5 = vld [vmem:[%s2876_s3 + $0x50] sm:$0xff] (!%p303_p3)   ;;  %v420_v10 = vshrl.u32 (!%p303_p3), %v419_v7, 7  ;;  %p434_p7 = scmp.ge.s32.totalorder (!%p303_p3), %s2342_s24, 1  ;;  %p435_p8 = scmp.le.s32.totalorder (!%p303_p3), %s2342_s24, 8 }
   0xb   : > { %1997 = vmatpush3.bf16.msra.mxu1 (!%p303_p3), %v2248_v0  ;;  %2012 = vmatprep.mubr.msk.bf16.mxu1 (!%p303_p3), %vm2361_vm0, %v2360_v1  ;;  %v2253_v6 = vld [vmem:[%s2876_s3 + $0x110] sm:$0xff] (!%p303_p3)   ;;  %v2254_v8 = vld [vmem:[%s2876_s3 + $0x58] sm:$0xff] (!%p303_p3)   ;;  %v2256_v11 = vld [vmem:[%s2876_s3 + $0x60] sm:$0xff] (!%p303_p3)   ;;  %s378_s13 = sadd.s32 (!%p303_p3), 1, %s2342_s24  ;;  %s2562_s18 = sadd.s32 (!%p303_p3), 2, %s2342_s24 }
   0xc   : > { %2077 = vmatpush3.bf16.msra.mxu0 (!%p303_p3), %v2249_v2  ;;  %1998 = vmatprep.subr.bf16.mxu1 (!%p303_p3), %v2360_v1  ;;  %v2255_v9 = vld [vmem:[%s2876_s3 + $0x118] sm:$0xff] (!%p303_p3)   ;;  %v2257_v12 = vld [vmem:[%s2876_s3 + $0x120] sm:$0xff] (!%p303_p3)   ;;  %v421_v13 = vadd.s32 (!%p303_p3), 8, %v420_v10  ;;  %v2258_v14 = vld [vmem:[%s2876_s3 + $0x68] sm:$0xff] (!%p303_p3)   ;;  %vm422_vm1 = vcmp.gt.s32.totalorder (!%p303_p3), %v420_v10, 0  ;;  %p2515_p9 = pnand (!%p303_p3), %p435_p8, %p434_p7  ;;  %p381_p10 = scmp.lt.s32.totalorder (!%p303_p3), %s378_s13, 9 }
   0xd   : > { %2078 = vmatprep.subr.bf16.mxu0 (!%p303_p3), %v2360_v1  ;;  %2092 = vmatprep.mubr.msk.bf16.mxu0 (!%p303_p3), %vm2361_vm0, %v2360_v1  ;;  %v2500_v15 = vld [vmem:[%s2877_s4] ss:$0 sm:$0xff] (!%p303_p3)  ;;  %v2259_v18 = vld [vmem:[%s2876_s3 + $0x128] sm:$0xff] (!%p303_p3)   ;;  %p469_p11 = scmp.ge.s32.totalorder (!%p303_p3), %s378_s13, 1  ;;  %p470_p12 = scmp.le.s32.totalorder (!%p303_p3), %s378_s13, 8  ;;  %v2260_v24 = vld [vmem:[%s2876_s3 + $0x70] sm:$0xff] (!%p303_p3)  }
   0xe   : > { %v2505_v16 = vld [vmem:[%s2878_s5] ss:$0 sm:$0xff] (!%p303_p3)  ;;  %vm425_vm2 = vcmp.lt.s32.totalorder (!%p303_p3), %v421_v13, 9  ;;  %v2261_v25 = vld [vmem:[%s2876_s3 + $0x130] sm:$0xff] (!%p303_p3)   ;;  %v2533_v27 = vsel (!%p303_p3), %vm422_vm1, 1.0, %v2360_v1  ;;  %v2262_v34 = vld [vmem:[%s2876_s3 + $0x78] sm:$0xff] (!%p303_p3)  }
   0xf   : > { %1999 = vmatpush3.bf16.msra.mxu1 (!%p303_p3), %v2250_v3  ;;  %v2539_v29 = vsel (!%p303_p3), %vm425_vm2, 1.0, %v2360_v1  ;;  %p2544_p13 = pnand (!%p303_p3), %p470_p12, %p469_p11  ;;  %v2263_v36 = vld [vmem:[%s2876_s3 + $0x138] sm:$0xff] (!%p303_p3)   ;;  %p392_p0 = scmp.lt.s32.totalorder (!%p303_p3), %s2562_s18, 9  ;;  %v2264_v51 = vld [vmem:[%s2876_s3] sm:$0xff] (!%p303_p3)   ;;  %v2266_v60 = vld [vmem:[%s2876_s3 + $0x8] sm:$0xff] (!%p303_p3)  }
  0x10   : > { %s2895_s25 = smov (!%p369_p5, %s2346_s25), 1  ;;  %2079 = vmatpush3.bf16.msra.mxu0 %v2251_v4  ;;  %2000 = vmatprep.subr.bf16.mxu1 %v2360_v1  ;;  %v2268_v0 = vld [vmem:[%s2876_s3 + $0x10] sm:$0xff]   ;;  %p492_p1 = scmp.ge.s32.totalorder %s2562_s18, 1  ;;  %v2265_v3 = vld [vmem:[%s2876_s3 + $0x140] sm:$0xff]   ;;  %v2274_v13 = vld [vmem:[%s2876_s3 + $0x28] sm:$0xff]  }
  0x11   : > { %s372_s16 = scalar_select %p371_p6, %s2342_s24, 9  ;;  %2080 = vmatprep.subr.bf16.mxu0 %v2360_v1  ;;  %v2272_v7 = vld [vmem:[%s2876_s3 + $0x20] sm:$0xff]  }
  0x12   : > { %s2466_s19 = smul.u32 20, %s2895_s25  ;;  %p493_p2 = scmp.le.s32.totalorder %s2562_s18, 8 }
  0x13   : > { %s1696_s22 = sshll.u32 %s372_s16, 1  ;;  %2001 = vmatpush3.bf16.msra.mxu1 %v2252_v5  ;;  %v2270_v5 = vld [vmem:[%s2876_s3 + $0x18] sm:$0xff]   ;;  %p402_p4 = scmp.lt.s32.totalorder %s2342_s24, 7 }
  0x14   : > { %s375_s23 = sadd.s32 %s2466_s19, %s1696_s22  ;;  %2081 = vmatpush3.bf16.msra.mxu0 %v2253_v6  ;;  %2002 = vmatprep.subr.bf16.mxu1 %v2360_v1  ;;  %p2611_p3 = pnand %p493_p2, %p492_p1  ;;  %v2267_v6 = vld [vmem:[%s2876_s3 + $0x148] sm:$0xff]  }
  0x15   : > { %s1697_s10 = sshll.u32 %s375_s23, 2  ;;  %2082 = vmatprep.subr.bf16.mxu0 %v2360_v1  ;;  %s2897_s24 = smov (!%p402_p4, %s2342_s24), 7 }
  0x16   : > { %s377_s17 = scalar_lea.vmem %s2873_s0, %s1697_s10  ;;  %s1702_s16 = sshll.u32 %s2895_s25, 3 }
  0x17   : > { %2003 = vmatpush3.bf16.msra.mxu1 %v2254_v8  ;;  %v432_v17 = vld [vmem:[%s377_s17] sm:$0xf]  ;;  %v433_v19 = vld [vmem:[%s377_s17 + $0x4] sm:$0x1]  ;;  %s1708_s20 = scalar_select %p2515_p9, 0, 1 }
  0x18   : > { %2083 = vmatpush3.bf16.msra.mxu0 %v2255_v9  ;;  %2004 = vmatprep.subr.bf16.mxu1 %v2360_v1  ;;  %v440_v20 = vunpack.c.l.bf16 %v432_v17  ;;  %v441_v21 = vunpack.c.l.bf16 %v433_v19  ;;  %s382_s21 = scalar_select %p381_p10, %s378_s13, 9  ;;  %v2271_v19 = vld [vmem:[%s2876_s3 + $0x158] sm:$0xff]  }
  0x19   : > { %2084 = vmatprep.subr.bf16.mxu0 %v2360_v1  ;;  %s439_s22 = scvt.s32.f32 %s1708_s20 }
  0x1a   : > { %v448_v22 = vmul.f32 %v2500_v15, %v440_v20  ;;  %v449_v23 = vmul.f32 %v2500_v15, %v441_v21  ;;  %s1698_s23 = sshll.u32 %s382_s21, 1  ;;  %v2276_v21 = vld [vmem:[%s2876_s3 + $0x30] sm:$0xff]  }
  0x1b   : > { %2005 = vmatpush3.bf16.msra.mxu1 %v2256_v11  ;;  %v462_v33 = vstv %s439_s22  ;;  %s385_s9 = sadd.s32 %s2466_s19, %s1698_s23  ;;  %v2269_v11 = vld [vmem:[%s2876_s3 + $0x150] sm:$0xff]  }
  0x1c   : > { %2085 = vmatpush3.bf16.msra.mxu0 %v2257_v12  ;;  %2006 = vmatprep.subr.bf16.mxu1 %v2360_v1  ;;  %v456_v26 = vadd.f32 %v2505_v16, %v448_v22  ;;  %v457_v28 = vadd.f32 %v2505_v16, %v449_v23  ;;  %s1699_s12 = sshll.u32 %s385_s9, 2 }
  0x1d   : > { %2086 = vmatprep.subr.bf16.mxu0 %v2360_v1  ;;  %s387_s17 = scalar_lea.vmem %s2874_s1, %s1699_s12 }
  0x1e   : > { %v458_v30 = vmax.f32 %v456_v26, 0.0  ;;  %v459_v31 = vmax.f32 %v457_v28, 0.0  ;;  %v466_v39 = vld [vmem:[%s387_s17] sm:$0xf]  ;;  %v467_v40 = vld [vmem:[%s387_s17 + $0x4] sm:$0x1] }
  0x1f   : > { %2007 = vmatpush3.bf16.msra.mxu1 %v2258_v14  ;;  %s1711_s20 = scalar_select %p2544_p13, 0, 1  ;;  %v475_v41 = vunpack.c.l.bf16 %v466_v39  ;;  %v476_v42 = vunpack.c.l.bf16 %v467_v40  ;;  %v2278_v26 = vld [vmem:[%s2876_s3 + $0x38] sm:$0xff]   ;;  %v2283_v39 = vld [vmem:[%s2876_s3 + $0x188] sm:$0xff]   ;;  %v2288_v40 = vld [vmem:[%s2876_s3 + $0xa0] sm:$0xff]  }
  0x20   : > { %2087 = vmatpush3.bf16.msra.mxu0 %v2259_v18  ;;  %2008 = vmatprep.subr.bf16.mxu1 %v2360_v1  ;;  %v460_v32 = vmul.f32 %v2533_v27, %v458_v30  ;;  %v461_v35 = vmul.f32 %v2539_v29, %v459_v31  ;;  %s393_s8 = scalar_select %p392_p0, %s2562_s18, 9 }
  0x21   : > { %2088 = vmatprep.subr.bf16.mxu0 %v2360_v1  ;;  %v477_v44 = vmul.f32 %v2500_v15, %v475_v41  ;;  %v478_v45 = vmul.f32 %v2500_v15, %v476_v42  ;;  %s474_s21 = scvt.s32.f32 %s1711_s20  ;;  %v2285_v41 = vld [vmem:[%s2876_s3 + $0x190] sm:$0xff]   ;;  %v2290_v42 = vld [vmem:[%s2876_s3 + $0xa8] sm:$0xff]  }
  0x22   : > { %v463_v37 = vmul.f32 %v462_v33, %v460_v32  ;;  %v464_v38 = vmul.f32 %v462_v33, %v461_v35  ;;  %s1700_s11 = sshll.u32 %s393_s8, 1  ;;  %v2277_v32 = vld [vmem:[%s2876_s3 + $0x170] sm:$0xff]   ;;  %v2282_v33 = vld [vmem:[%s2876_s3 + $0x88] sm:$0xff]  }
  0x23   : > { %2009 = vmatpush3.bf16.msra.mxu1 %v2260_v24  ;;  %v479_v48 = vadd.f32 %v2505_v16, %v477_v44  ;;  %v480_v49 = vadd.f32 %v2505_v16, %v478_v45  ;;  %v485_v55 = vstv %s474_s21  ;;  %s396_s14 = sadd.s32 %s2466_s19, %s1700_s11  ;;  %v2284_v35 = vld [vmem:[%s2876_s3 + $0x90] sm:$0xff]   ;;  %v2287_v44 = vld [vmem:[%s2876_s3 + $0x198] sm:$0xff]  }
  0x24   : > { %2089 = vmatpush3.bf16.msra.mxu0 %v2261_v25  ;;  %2010 = vmatprep.subr.bf16.mxu1 %v2360_v1  ;;  %v2567_v43 = vpack.c.bf16 %v464_v38, %v463_v37  ;;  %s1701_s17 = sshll.u32 %s396_s14, 2  ;;  %v2273_v25 = vld [vmem:[%s2876_s3 + $0x160] sm:$0xff]   ;;  %v2286_v38 = vld [vmem:[%s2876_s3 + $0x98] sm:$0xff]   ;;  %v2292_v45 = vld [vmem:[%s2876_s3 + $0xb0] sm:$0xff]  }
  0x25   : > { %2090 = vmatprep.subr.bf16.mxu0 %v2360_v1  ;;  %v481_v52 = vmax.f32 %v479_v48, 0.0  ;;  %v482_v53 = vmax.f32 %v480_v49, 0.0  ;;  %s398_s23 = scalar_lea.vmem %s2875_s2, %s1701_s17  ;;  %v2281_v37 = vld [vmem:[%s2876_s3 + $0x180] sm:$0xff]   ;;  %v2291_v48 = vld [vmem:[%s2876_s3 + $0x1a8] sm:$0xff]  }
  0x26   : > { %v546_v46 = vshrl.u32 %v2567_v43, 16  ;;  %v548_v47 = vshll.u32 %v2567_v43, 16  ;;  %v489_v8 = vld [vmem:[%s398_s23] sm:$0xf]  ;;  %v490_v9 = vld [vmem:[%s398_s23 + $0x4] sm:$0x1] }
  0x27   : > { %2011 = vmatpush3.bf16.msra.mxu1 %v2262_v34  ;;  %v483_v56 = vmul.f32 %v2533_v27, %v481_v52  ;;  %v484_v57 = vmul.f32 %v2539_v29, %v482_v53  ;;  %s1712_s12 = scalar_select %p2611_p3, 0, 1  ;;  %v498_v10 = vunpack.c.l.bf16 %v489_v8  ;;  %v499_v12 = vunpack.c.l.bf16 %v490_v9  ;;  %v2279_v34 = vld [vmem:[%s2876_s3 + $0x178] sm:$0xff]   ;;  %v2300_v53 = vld [vmem:[%s2876_s3 + $0xd0] sm:$0xff]   ;;  %v2312_v9 = vld [vmem:[%s2876_s3 + $0x200] sm:$0xff]  }
  0x28   : > { %2091 = vmatpush3.bf16.msra.mxu0 %v2263_v36  ;;  %2016 = vmatprep.subr.bf16.mxu1 %v2360_v1  ;;  %v550_v50 = vrot.slane %v548_v47, 1  ;;  %v2294_v47 = vld [vmem:[%s2876_s3 + $0xb8] sm:$0xff]   ;;  %v747_v49 = vrot.slane %v2567_v43, 1 }
  0x29   : > { %2096 = vmatprep.subr.bf16.mxu0 %v2360_v1  ;;  %v486_v58 = vmul.f32 %v485_v55, %v483_v56  ;;  %v487_v59 = vmul.f32 %v485_v55, %v484_v57  ;;  %v500_v14 = vmul.f32 %v2500_v15, %v498_v10  ;;  %s497_s17 = scvt.s32.f32 %s1712_s12  ;;  %v501_v17 = vmul.f32 %v2500_v15, %v499_v12  ;;  %v2295_v52 = vld [vmem:[%s2876_s3 + $0x1b8] sm:$0xff]   ;;  %v2299_v56 = vld [vmem:[%s2876_s3 + $0x1c8] sm:$0xff]   ;;  %v2304_v57 = vld [vmem:[%s2876_s3 + $0xe0] sm:$0xff]  }
  0x2a   : > { %v551_v54 = vor.u32 %v550_v50, %v546_v46  ;;  %v2289_v46 = vld [vmem:[%s2876_s3 + $0x1a0] sm:$0xff]   ;;  %v2302_v55 = vld [vmem:[%s2876_s3 + $0xd8] sm:$0xff]   ;;  %v2314_v10 = vld [vmem:[%s2876_s3 + $0x210] sm:$0xff]  }
  0x2b   : > { %v2590_v61 = vpack.c.bf16 %v487_v59, %v486_v58  ;;  %v502_v18 = vadd.f32 %v2505_v16, %v500_v14  ;;  %v503_v20 = vadd.f32 %v2505_v16, %v501_v17  ;;  %v508_v23 = vstv %s497_s17  ;;  %v2296_v50 = vld [vmem:[%s2876_s3 + $0xc0] sm:$0xff]   ;;  %v2301_v58 = vld [vmem:[%s2876_s3 + $0x1d0] sm:$0xff]   ;;  %v2306_v59 = vld [vmem:[%s2876_s3 + $0xe8] sm:$0xff]   ;;  %s405_s17 = sadd.s32 %s1702_s16, %s2897_s24 }
  0x2c   : > { %2013 = vmatmul.mubr.bf16.vlgmr.msra.gmra.mrb[0].mxu1 %v551_v54  ;;  %v2297_v54 = vld [vmem:[%s2876_s3 + $0x1c0] sm:$0xff]   ;;  %v2318_v14 = vld [vmem:[%s2876_s3 + $0x230] sm:$0xff]   ;;  %v2319_v17 = vld [vmem:[%s2876_s3 + $0x238] sm:$0xff]   ;;  %s1703_s20 = sshll.u32 %s405_s17, 2  ;;  %s1705_s25 = sshll.u32 %s405_s17, 1 }
  0x2d   : > { %2017 = vmatpush3.bf16.msra.mxu1 %v2264_v51  ;;  %2032 = vmatprep.mubr.msk.bf16.mxu1 %vm2361_vm0, %v2360_v1  ;;  %v962_v62 = vshrl.u32 %v2590_v61, 16  ;;  %v964_v63 = vshll.u32 %v2590_v61, 16  ;;  %v504_v22 = vmax.f32 %v502_v18, 0.0  ;;  %v505_v15 = vmax.f32 %v503_v20, 0.0  ;;  %v2293_v51 = vld [vmem:[%s2876_s3 + $0x1b0] sm:$0xff]   ;;  %v2316_v12 = vld [vmem:[%s2876_s3 + $0x220] sm:$0xff]   ;;  %s407_s22 = scalar_lea.vmem %s2879_s6, %s1703_s20  ;;  %s415_s18 = scalar_lea.vmem %s2880_s7, %s1705_s25 }
  0x2e   : > { %2018 = vmatprep.subr.bf16.mxu1 %v2360_v1  ;;  %v1076_v36 = vrot.slane %v2590_v61, 1 }
  0x2f   : > { %v966_v2 = vrot.slane %v964_v63, 1  ;;  %v506_v24 = vmul.f32 %v2533_v27, %v504_v22  ;;  %v507_v16 = vmul.f32 %v2539_v29, %v505_v15  ;;  %v2275_v27 = vld [vmem:[%s2876_s3 + $0x168] sm:$0xff]   ;;  %v2280_v29 = vld [vmem:[%s2876_s3 + $0x80] sm:$0xff]  }
  0x30   : > { %v2305_v63 = vld [vmem:[%s2876_s3 + $0x1e0] sm:$0xff]  }
  0x31   : > { %2019 = vmatpush3.bf16.msra.mxu1 %v2266_v60  ;;  %v967_v4 = vor.u32 %v966_v2, %v962_v62  ;;  %v509_v28 = vmul.f32 %v508_v23, %v506_v24  ;;  %v510_v30 = vmul.f32 %v508_v23, %v507_v16  ;;  %v2303_v60 = vld [vmem:[%s2876_s3 + $0x1d8] sm:$0xff]   ;;  %v2308_v62 = vld [vmem:[%s2876_s3 + $0xf0] sm:$0xff]   ;;  %v2307_v2 = vld [vmem:[%s2876_s3 + $0x1e8] sm:$0xff]  }
  0x32   : > { %2020 = vmatprep.subr.bf16.mxu1 %v2360_v1 }
  0x33   : > { %2093 = vmatmul.mubr.bf16.vlgmr.msra.gmra.mrb[0].mxu0 %v967_v4  ;;  %v2660_v31 = vpack.c.bf16 %v510_v30, %v509_v28  ;;  %v2309_v4 = vld [vmem:[%s2876_s3 + $0x1f0] sm:$0xff]  }
  0x34   : > { %2097 = vmatpush3.bf16.msra.mxu0 %v2265_v3  ;;  %2112 = vmatprep.mubr.msk.bf16.mxu0 %vm2361_vm0, %v2360_v1 }
  0x35   : > { %2021 = vmatpush3.bf16.msra.mxu1 %v2268_v0  ;;  %2098 = vmatprep.subr.bf16.mxu0 %v2360_v1  ;;  %v2310_v0 = vld [vmem:[%s2876_s3 + $0xf8] sm:$0xff]   ;;  %v1293_v3 = vshll.u32 %v2660_v31, 16  ;;  %v1405_v18 = vrot.slane %v2660_v31, 1 }
  0x36   : > { %2022 = vmatprep.subr.bf16.mxu1 %v2360_v1 }
  0x38   : > { %2099 = vmatpush3.bf16.msra.mxu0 %v2267_v6  ;;  %v1295_v6 = vrot.slane %v1293_v3, 1 }
  0x39   : > { %2023 = vmatpush3.bf16.msra.mxu1 %v2270_v5  ;;  %2100 = vmatprep.subr.bf16.mxu0 %v2360_v1  ;;  %v1291_v5 = vshrl.u32 %v2660_v31, 16 }
  0x3a   : > { %2024 = vmatprep.subr.bf16.mxu1 %v2360_v1 }
  0x3b   : > { %v1296_v8 = vor.u32 %v1295_v6, %v1291_v5 }
  0x3c   : > { %2101 = vmatpush3.bf16.msra.mxu0 %v2269_v11  ;;  %v2315_v11 = vld [vmem:[%s2876_s3 + $0x218] sm:$0xff]  }
  0x3d   : > { %2025 = vmatpush3.bf16.msra.mxu1 %v2272_v7  ;;  %2102 = vmatprep.subr.bf16.mxu0 %v2360_v1  ;;  %v2311_v7 = vld [vmem:[%s2876_s3 + $0x1f8] sm:$0xff]  }
  0x3e   : > { %2026 = vmatprep.subr.bf16.mxu1 %v2360_v1 }
  0x40   : > { %2103 = vmatpush3.bf16.msra.mxu0 %v2271_v19 }
  0x41   : > { %2027 = vmatpush3.bf16.msra.mxu1 %v2274_v13  ;;  %2104 = vmatprep.subr.bf16.mxu0 %v2360_v1  ;;  %v2317_v13 = vld [vmem:[%s2876_s3 + $0x228] sm:$0xff]  }
  0x42   : > { %2028 = vmatprep.subr.bf16.mxu1 %v2360_v1 }
  0x44   : > { %2105 = vmatpush3.bf16.msra.mxu0 %v2273_v25 }
  0x45   : > { %2029 = vmatpush3.bf16.msra.mxu1 %v2276_v21  ;;  %2106 = vmatprep.subr.bf16.mxu0 %v2360_v1 }
  0x46   : > { %2030 = vmatprep.subr.bf16.mxu1 %v2360_v1 }
  0x48   : > { %2107 = vmatpush3.bf16.msra.mxu0 %v2275_v27 }
  0x49   : > { %2031 = vmatpush3.bf16.msra.mxu1 %v2278_v26  ;;  %2108 = vmatprep.subr.bf16.mxu0 %v2360_v1 }
  0x4a   : > { %2036 = vmatprep.subr.bf16.mxu1 %v2360_v1 }
  0x4c   : > { %2033 = vmatmul.mubr.bf16.vlgmr.msra.gmra.mrb[0].mxu1 %v2567_v43  ;;  %2109 = vmatpush3.bf16.msra.mxu0 %v2277_v32  ;;  %v2298_v43 = vld [vmem:[%s2876_s3 + $0xc8] sm:$0xff]  }
  0x4d   : > { %2037 = vmatpush3.bf16.msra.mxu1 %v2280_v29  ;;  %2052 = vmatprep.mubr.msk.bf16.mxu1 %vm2361_vm0, %v2360_v1 }
  0x4e   : > { %2038 = vmatprep.subr.bf16.mxu1 %v2360_v1  ;;  %2110 = vmatprep.subr.bf16.mxu0 %v2360_v1 }
  0x50   : > { %2111 = vmatpush3.bf16.msra.mxu0 %v2279_v34 }
  0x51   : > { %2039 = vmatpush3.bf16.msra.mxu1 %v2282_v33  ;;  %2116 = vmatprep.subr.bf16.mxu0 %v2360_v1 }
  0x52   : > { %2040 = vmatprep.subr.bf16.mxu1 %v2360_v1 }
  0x53   : > { %2113 = vmatmul.mubr.bf16.vlgmr.msra.gmra.mrb[0].mxu0 %v1076_v36 }
  0x54   : > { %2117 = vmatpush3.bf16.msra.mxu0 %v2281_v37  ;;  %2132 = vmatprep.mubr.msk.bf16.mxu0 %vm2361_vm0, %v2360_v1 }
  0x55   : > { %2041 = vmatpush3.bf16.msra.mxu1 %v2284_v35  ;;  %2118 = vmatprep.subr.bf16.mxu0 %v2360_v1 }
  0x56   : > { %2042 = vmatprep.subr.bf16.mxu1 %v2360_v1 }
  0x58   : > { %2119 = vmatpush3.bf16.msra.mxu0 %v2283_v39 }
  0x59   : > { %2043 = vmatpush3.bf16.msra.mxu1 %v2286_v38  ;;  %2120 = vmatprep.subr.bf16.mxu0 %v2360_v1 }
  0x5a   : > { %2044 = vmatprep.subr.bf16.mxu1 %v2360_v1 }
  0x5c   : > { %2121 = vmatpush3.bf16.msra.mxu0 %v2285_v41 }
  0x5d   : > { %2045 = vmatpush3.bf16.msra.mxu1 %v2288_v40  ;;  %2122 = vmatprep.subr.bf16.mxu0 %v2360_v1 }
  0x5e   : > { %2046 = vmatprep.subr.bf16.mxu1 %v2360_v1 }
  0x60   : > { %2123 = vmatpush3.bf16.msra.mxu0 %v2287_v44 }
  0x61   : > { %2047 = vmatpush3.bf16.msra.mxu1 %v2290_v42  ;;  %2124 = vmatprep.subr.bf16.mxu0 %v2360_v1 }
  0x62   : > { %2048 = vmatprep.subr.bf16.mxu1 %v2360_v1 }
  0x64   : > { %2125 = vmatpush3.bf16.msra.mxu0 %v2289_v46 }
  0x65   : > { %2049 = vmatpush3.bf16.msra.mxu1 %v2292_v45  ;;  %2126 = vmatprep.subr.bf16.mxu0 %v2360_v1 }
  0x66   : > { %2050 = vmatprep.subr.bf16.mxu1 %v2360_v1 }
  0x68   : > { %2127 = vmatpush3.bf16.msra.mxu0 %v2291_v48 }
  0x69   : > { %2051 = vmatpush3.bf16.msra.mxu1 %v2294_v47  ;;  %2128 = vmatprep.subr.bf16.mxu0 %v2360_v1 }
  0x6a   : > { %2056 = vmatprep.subr.bf16.mxu1 %v2360_v1 }
  0x6c   : > { %2053 = vmatmul.mubr.bf16.vlgmr.msra.gmra.mrb[0].mxu1 %v747_v49  ;;  %2129 = vmatpush3.bf16.msra.mxu0 %v2293_v51 }
  0x6d   : > { %2057 = vmatpush3.bf16.msra.mxu1 %v2296_v50  ;;  %2072 = vmatprep.mubr.msk.bf16.mxu1 %vm2361_vm0, %v2360_v1 }
  0x6e   : > { %2058 = vmatprep.subr.bf16.mxu1 %v2360_v1  ;;  %2130 = vmatprep.subr.bf16.mxu0 %v2360_v1 }
  0x70   : > { %2131 = vmatpush3.bf16.msra.mxu0 %v2295_v52 }
  0x71   : > { %2059 = vmatpush3.bf16.msra.mxu1 %v2298_v43  ;;  %2136 = vmatprep.subr.bf16.mxu0 %v2360_v1 }
  0x72   : > { %2060 = vmatprep.subr.bf16.mxu1 %v2360_v1 }
  0x73   : > { %2133 = vmatmul.mubr.bf16.vlgmr.msra.gmra.mrb[0].mxu0 %v2660_v31 }
  0x74   : > { %2137 = vmatpush3.bf16.msra.mxu0 %v2297_v54  ;;  %2152 = vmatprep.mubr.msk.bf16.mxu0 %vm2361_vm0, %v2360_v1 }
  0x75   : > { %2061 = vmatpush3.bf16.msra.mxu1 %v2300_v53  ;;  %2138 = vmatprep.subr.bf16.mxu0 %v2360_v1 }
  0x76   : > { %2062 = vmatprep.subr.bf16.mxu1 %v2360_v1 }
  0x78   : > { %2139 = vmatpush3.bf16.msra.mxu0 %v2299_v56 }
  0x79   : > { %2063 = vmatpush3.bf16.msra.mxu1 %v2302_v55  ;;  %2140 = vmatprep.subr.bf16.mxu0 %v2360_v1 }
  0x7a   : > { %2064 = vmatprep.subr.bf16.mxu1 %v2360_v1 }
  0x7c   : > { %2141 = vmatpush3.bf16.msra.mxu0 %v2301_v58 }
  0x7d   : > { %2065 = vmatpush3.bf16.msra.mxu1 %v2304_v57  ;;  %2142 = vmatprep.subr.bf16.mxu0 %v2360_v1 }
  0x7e   : > { %2066 = vmatprep.subr.bf16.mxu1 %v2360_v1 }
  0x80   : > { %2143 = vmatpush3.bf16.msra.mxu0 %v2303_v60 }
  0x81   : > { %2067 = vmatpush3.bf16.msra.mxu1 %v2306_v59  ;;  %2144 = vmatprep.subr.bf16.mxu0 %v2360_v1 }
  0x82   : > { %2068 = vmatprep.subr.bf16.mxu1 %v2360_v1 }
  0x84   : > { %2145 = vmatpush3.bf16.msra.mxu0 %v2305_v63 }
  0x85   : > { %2069 = vmatpush3.bf16.msra.mxu1 %v2308_v62  ;;  %2146 = vmatprep.subr.bf16.mxu0 %v2360_v1 }
  0x86   : > { %2070 = vmatprep.subr.bf16.mxu1 %v2360_v1 }
  0x88   : > { %2147 = vmatpush3.bf16.msra.mxu0 %v2307_v2 }
  0x89   : > { %2071 = vmatpush3.bf16.msra.mxu1 %v2310_v0  ;;  %2148 = vmatprep.subr.bf16.mxu0 %v2360_v1 }
  0x8c   : > { %2073 = vmatmul.mubr.bf16.vlgmr.msra.gmra.mrb[0].mxu1 %v2590_v61  ;;  %2149 = vmatpush3.bf16.msra.mxu0 %v2309_v4  ;;  %v2313_v61 = vld [vmem:[%s2876_s3 + $0x208] sm:$0xff]  }
  0x8d   : > { %2150 = vmatprep.subr.bf16.mxu0 %v2360_v1 }
  0x90   : > { %2151 = vmatpush3.bf16.msra.mxu0 %v2311_v7 }
  0x91   : > { %2156 = vmatprep.subr.bf16.mxu0 %v2360_v1 }
  0x93   : > { %2153 = vmatmul.mubr.bf16.vlgmr.msra.gmra.mrb[0].mxu0 %v1296_v8 }
  0x94   : > { %2157 = vmatpush3.bf16.msra.mxu0 %v2312_v9  ;;  %2172 = vmatprep.mubr.msk.bf16.mxu0 %vm2361_vm0, %v2360_v1 }
  0x95   : > { %2158 = vmatprep.subr.bf16.mxu0 %v2360_v1 }
  0x98   : > { %2159 = vmatpush3.bf16.msra.mxu0 %v2313_v61 }
  0x99   : > { %2160 = vmatprep.subr.bf16.mxu0 %v2360_v1 }
  0x9c   : > { %2161 = vmatpush3.bf16.msra.mxu0 %v2314_v10 }
  0x9d   : > { %2162 = vmatprep.subr.bf16.mxu0 %v2360_v1 }
  0xa0   : > { %2163 = vmatpush3.bf16.msra.mxu0 %v2315_v11 }
  0xa1   : > { %2164 = vmatprep.subr.bf16.mxu0 %v2360_v1 }
  0xa4   : > { %2165 = vmatpush3.bf16.msra.mxu0 %v2316_v12 }
  0xa5   : > { %2166 = vmatprep.subr.bf16.mxu0 %v2360_v1 }
  0xa8   : > { %2167 = vmatpush3.bf16.msra.mxu0 %v2317_v13 }
  0xa9   : > { %2168 = vmatprep.subr.bf16.mxu0 %v2360_v1 }
  0xac   : > { %2169 = vmatpush3.bf16.msra.mxu0 %v2318_v14 }
  0xad   : > { %2170 = vmatprep.subr.bf16.mxu0 %v2360_v1 }
  0xb0   : > { %2171 = vmatpush3.bf16.msra.mxu0 %v2319_v17 }
  0xb3   : > { %2173 = vmatmul.mubr.bf16.vlgmr.msra.gmra.mrb[0].mxu0 %v1405_v18 }
 0x15f   : > { %v937_v19 = vpop.f32.mrb[0].mxu1 }
 0x160   : > { %v2074_v20 = vpop.f32.mrb[1].mxu1 }
 0x161   : > { %v940_v21 = vpop.f32.mrb[2].mxu1 }
 0x162   : > { %v2075_v22 = vpop.f32.mrb[3].mxu1 }
 0x186   : > { %v1489_v15 = vpop.f32.mrb[0].mxu0 }
 0x187   : > { %v2176_v23 = vadd.f32 %v1489_v15, %v937_v19  ;;  %v2174_v24 = vpop.f32.mrb[1].mxu0 }
 0x188   : > { %v1492_v1 = vpop.f32.mrb[2].mxu0 }
 0x189   : > { %v1496_v25 = vrot.slane %v2176_v23, 4  ;;  %v1503_v16 = vmul.f32 %v2176_v23, %v2176_v23  ;;  %v1511_v26 = vpack.c.bf16 %v2176_v23, %v2176_v23  ;;  %v2175_v28 = vpop.f32.mrb[3].mxu0 }
 0x18b   : > { %v1497_v30 = vadd.f32 %v2176_v23, %v1496_v25  ;;  %v1504_v27 = vrot.slane %v1503_v16, 4  ;;  %1512 = vst [vmem:[%s407_s22] sm:$0xf] %v1511_v26 }
 0x18d   : > { %v1498_v31 = vrot.slane %v1497_v30, 2  ;;  %v1505_v29 = vadd.f32 %v1504_v27, %v1503_v16 }
 0x18f   : > { %v1499_v32 = vadd.f32 %v1498_v31, %v1497_v30  ;;  %v1506_v33 = vrot.slane %v1505_v29, 2 }
 0x191   : > { %v1500_v34 = vrot.slane %v1499_v32, 1  ;;  %v1507_v35 = vadd.f32 %v1506_v33, %v1505_v29 }
 0x193   : > { %v1501_v36 = vadd.f32 %v1500_v34, %v1499_v32  ;;  %v1508_v37 = vrot.slane %v1507_v35, 1 }
 0x195   : > { %1502 = vst [vmem:[%s415_s18] sm:$0x1] %v1501_v36  ;;  %v1509_v38 = vadd.f32 %v1508_v37, %v1507_v35 }
 0x197   : > { %1510 = vst [vmem:[%s415_s18 + $0x1] sm:$0x1] %v1509_v38 }
 0x198 PF: > { %s18_s28 = sadd.s32 1, %s2358_s28   ;;  %s2884_s24 = smov %s2350_s26 }
 0x199   : > { %p15_p5 = scmp.ge.s32.totalorder %s18_s28, 18   ;;  %s2885_s25 = smov %s2354_s27 }
 0x19a   : > { %s2886_s26 = smov %s2889_s29  ;;  %s2887_s27 = smov %s2893_s30 }
 0x19b   :  { %17 = sbr.rel (!%p15_p5) target bundleno = 3 (0x3), region = 100 }

</bundles_post_ra>
